<compile_context>
chip_gen: v7x
topology: tpu7x:2x2x1
jax: 0.10.0
libtpu: 0.0.40
codegen_flags: <defaults>
</compile_context>

<pallas_src>
import functools

import numpy as np

import jax
import jax.numpy as jnp
from jax.experimental import pallas as pl
from jax.experimental.pallas import tpu as pltpu


# ---------------------------------------------------------------------------
# Fused kernel: [conv3x3 + BN + ReLU] x L   +   2x2 stride-2 max-pool + indices
# ---------------------------------------------------------------------------
def _fused_conv_block_kernel(*refs, num_layers, rtot, W, cout, eps, inv_count):
    # refs = (x, [M_l, gamma_l, beta_l]*L, R, row_mask, pool_base, v_out, i_out)
    x_ref = refs[0]
    layer_refs = refs[1:1 + 3 * num_layers]
    r_ref = refs[1 + 3 * num_layers]
    mask_ref = refs[2 + 3 * num_layers]
    base_ref = refs[3 + 3 * num_layers]
    v_ref = refs[4 + 3 * num_layers]
    i_ref = refs[5 + 3 * num_layers]

    wcout = W * cout
    mask = mask_ref[...]                                  # (rtot, wcout) 0/1 f32
    Rmat = r_ref[...]                                     # (wcout, wcout) f32

    # Activation slab: (rtot, W*Cin) f32.  Real rows sit at container rows
    # [1, 1+H) of each image; guard rows are zero (host pads them, the mask
    # keeps them zero between layers).
    P = x_ref[...]

    for l in range(num_layers):
        m_ref = layer_refs[3 * l]                         # (3, W*Cin_l, wcout) bf16
        gamma = layer_refs[3 * l + 1][...]                # (1, wcout) f32
        beta = layer_refs[3 * l + 2][...]                 # (1, wcout) f32

        # 3x3 conv: bf16 MXU matmuls (banded matrices encode the W taps + W
        # zero padding); the H taps are two sublane rolls on the f32 results.
        Pb = P.astype(jnp.bfloat16)
        u0 = jnp.dot(Pb, m_ref[0], preferred_element_type=jnp.float32)
        u1 = jnp.dot(Pb, m_ref[1], preferred_element_type=jnp.float32)
        u2 = jnp.dot(Pb, m_ref[2], preferred_element_type=jnp.float32)
        conv = (pltpu.roll(u0, shift=1, axis=0)           # row r <- u0[r-1]
                + u1
                + pltpu.roll(u2, shift=rtot - 1, axis=0)  # row r <- u2[r+1]
                ) * mask                                  # zero the guard rows

        # BatchNorm2d (training-mode forward), single pass, all stats in f32:
        # sum over rows first (VPU/XLU), then one tiny group-sum matmul that
        # replicates the per-channel totals across the W lane groups.
        s = jnp.sum(conv, axis=0, keepdims=True)          # (1, wcout)
        q = jnp.sum(conv * conv, axis=0, keepdims=True)   # (1, wcout)
        s_rep = jnp.dot(s, Rmat, preferred_element_type=jnp.float32)
        q_rep = jnp.dot(q, Rmat, preferred_element_type=jnp.float32)
        mean = s_rep * inv_count
        var = q_rep * inv_count - mean * mean             # E[x^2] - E[x]^2 (f32)
        scale = gamma * jax.lax.rsqrt(var + eps)
        shift = beta - mean * scale

        act = jnp.maximum(conv * scale + shift, 0.0)
        if l < num_layers - 1:                            # keep guards zero for
            act = act * mask                              # the next conv layer
        P = act                                           # (rtot, wcout)

    # ---- fused 2x2 stride-2 max pool with PyTorch-style flat indices --------
    # Candidates via XLU rolls; only even-h rows / even-w lane blocks are read
    # back by the wrapper, so the circular wraparound never lands in outputs.
    Pd = pltpu.roll(P, shift=rtot - 1, axis=0)            # row r   -> P[r+1]
    Pl = pltpu.roll(P, shift=wcout - cout, axis=1)        # lane q  -> P[:, q+cout]
    Pdl = pltpu.roll(Pd, shift=wcout - cout, axis=1)

    base = base_ref[...]                                  # h*W + w (int32)
    best_v = P                                            # first tap (h, w)
    best_i = base
    # Row-major tap order + strict '>' keeps the FIRST max (PyTorch tie-break).
    for cand, off in ((Pl, 1), (Pd, W), (Pdl, W + 1)):
        take = cand > best_v
        best_i = jnp.where(take, base + off, best_i)
        best_v = jnp.where(take, cand, best_v)

    # 128-lane-dense stores; non-pooled rows / odd-w blocks trimmed by wrapper.
    v_ref[...] = best_v
    i_ref[...] = best_i


# ---------------------------------------------------------------------------
# Parameter init (PyTorch-default shapes/init) + host-side packing
# ---------------------------------------------------------------------------
def init_conv_block_params(key, in_features, out_features, num_conv_layers):
    """Deterministic params mirroring PyTorch defaults (Conv2d OIHW weights,
    kaiming-uniform bound; BatchNorm2d gamma=1, beta=0)."""
    params = []
    cin = in_features
    for _ in range(num_conv_layers):
        key, wk = jax.random.split(key)
        bound = 1.0 / float(cin * 9) ** 0.5
        w = jax.random.uniform(wk, (out_features, cin, 3, 3), jnp.float32,
                               -bound, bound)             # OIHW, like PyTorch
        params.append((w,
                       jnp.ones((out_features,), jnp.float32),
                       jnp.zeros((out_features,), jnp.float32)))
        cin = out_features
    return params


def pack_conv_block_params(params, H, W):
    """One-time host-side packing into lane-dense, bf16 MXU-ready operands."""
    num_layers = len(params)
    cout = params[0][0].shape[0]
    cin0 = params[0][0].shape[1]
    # Pad input channels so layer 0's lane width W*cin is a multiple of 128
    # (unmasked vreg loads + full MXU K; biggest relative win on v5e).
    if (W * cin0) % 128 != 0 and 128 % W == 0:
        cin_pad = ((W * cin0 + 127) // 128) * (128 // W)
    else:
        cin_pad = cin0
    wcout = W * cout

    layer_ops = []
    ci_prev = cin_pad
    for (w_oihw, gamma, beta) in params:
        co, ci, _, _ = w_oihw.shape
        w = np.zeros((3, 3, ci_prev, co), np.float32)     # zero rows for padding
        w[:, :, :ci, :] = np.asarray(jax.device_get(w_oihw)).transpose(2, 3, 1, 0)
        # Banded matrices: M[dy, ws*ci + c_in, v*co + c_out] = K[dy, ws-v+1, ci, co]
        # for |ws - v| <= 1, else 0 (encodes the W taps AND the W zero padding).
        M = np.zeros((3, W * ci_prev, W * co), np.float32)
        for dy in range(3):
            for v in range(W):
                for dx in range(3):
                    ws = v + dx - 1
                    if 0 <= ws < W:
                        M[dy, ws * ci_prev:(ws + 1) * ci_prev,
                          v * co:(v + 1) * co] = w[dy, dx]
        gamma_rep = np.tile(np.asarray(jax.device_get(gamma)), W).reshape(1, wcout)
        beta_rep = np.tile(np.asarray(jax.device_get(beta)), W).reshape(1, wcout)
        layer_ops.append((jnp.asarray(M, dtype=jnp.bfloat16),   # bf16 MXU operand
                          jnp.asarray(gamma_rep), jnp.asarray(beta_rep)))
        ci_prev = co

    # R: per-channel sum over the W lane-groups, replicated back to every lane.
    R = jnp.asarray(np.kron(np.ones((W, W), np.float32),
                            np.eye(cout, dtype=np.float32)))
    # Constant-size per-image row container: 1 guard row on top, the rest of
    # the 8-alignment padding at the bottom (band = rows [1, 1+H)).
    Hp0 = ((H + 2 + 7) // 8) * 8
    return dict(layer_ops=layer_ops, R=R, H=H, W=W, cout=cout,
                cin=cin0, cin_pad=cin_pad, Hp0=Hp0, num_layers=num_layers)


# ---------------------------------------------------------------------------
# Forward wrapper
# ---------------------------------------------------------------------------
def conv_block_forward(x_nchw, packed, *, eps=1e-5):
    """ConvBlock forward. Input NCHW; returns (pooled NCHW f32, indices NCHW i32)."""
    H, W, cout, L = packed["H"], packed["W"], packed["cout"], packed["num_layers"]
    cin, cin_pad, Hp0 = packed["cin"], packed["cin_pad"], packed["Hp0"]
    N, cx, Hx, Wx = x_nchw.shape
    assert (cx, Hx, Wx) == (cin, H, W)
    assert H % 2 == 0 and W % 2 == 0
    Ho, Wo = H // 2, W // 2
    wcout = W * cout
    wcin0 = W * cin_pad
    rtot = N * Hp0

    # Host/XLA-side prep (one tiny pass): NCHW -> NHWC, zero-pad channels to
    # cin_pad, fold W*C into lanes, add zero guard rows, stack batch on rows.
    x = jnp.transpose(x_nchw, (0, 2, 3, 1))               # (N, H, W, cin)
    if cin_pad > cin:
        x = jnp.pad(x, ((0, 0), (0, 0), (0, 0), (0, cin_pad - cin)))
    x = x.reshape(N, H, wcin0)
    x = jnp.pad(x, ((0, 0), (1, Hp0 - H - 1), (0, 0)))    # guard rows
    x = x.reshape(rtot, wcin0)

    # Trace-time constants: in-band row mask and pooled-index base (h*W + w).
    mask_col = np.zeros((Hp0, 1), np.float32)
    mask_col[1:1 + H, 0] = 1.0
    row_mask = jnp.asarray(np.tile(mask_col, (N, wcout)))             # (rtot, wcout)
    h_col = np.zeros((Hp0, 1), np.int64)
    h_col[1:1 + H, 0] = np.arange(H)
    base_np = np.tile(h_col, (N, 1)) * W + (np.arange(wcout) // cout)[None, :]
    pool_base = jnp.asarray(base_np.astype(np.int32))                 # (rtot, wcout)

    inputs = [x]
    for (M, g, b) in packed["layer_ops"]:
        inputs += [M, g, b]
    inputs += [packed["R"], row_mask, pool_base]

    def _full_spec(a):
        nd = a.ndim
        return pl.BlockSpec(a.shape, lambda i, _nd=nd: (0,) * _nd)

    kernel = functools.partial(_fused_conv_block_kernel, num_layers=L, rtot=rtot,
                               W=W, cout=cout, eps=eps,
                               inv_count=1.0 / float(N * H * W))
    pooled_raw, idx_raw = pl.pallas_call(
        kernel,
        out_shape=(jax.ShapeDtypeStruct((rtot, wcout), jnp.float32),
                   jax.ShapeDtypeStruct((rtot, wcout), jnp.int32)),
        grid=(1,),
        in_specs=[_full_spec(a) for a in inputs],
        out_specs=(pl.BlockSpec((rtot, wcout), lambda i: (0, 0)),
                   pl.BlockSpec((rtot, wcout), lambda i: (0, 0))),
        compiler_params=pltpu.CompilerParams(
            dimension_semantics=("arbitrary",)),
    )(*inputs)

    # Host-side trim of the lane-dense kernel outputs back to NCHW:
    # pooled values live at even-h band rows and even-w lane blocks.
    vals = pooled_raw.reshape(N, Hp0, W, cout)[:, 1:1 + H:2, 0::2, :]
    idxs = idx_raw.reshape(N, Hp0, W, cout)[:, 1:1 + H:2, 0::2, :]
    pooled = jnp.transpose(vals, (0, 3, 1, 2))            # (N, cout, Ho, Wo)
    indices = jnp.transpose(idxs, (0, 3, 1, 2))
    return pooled, indices


# ---------------------------------------------------------------------------
# Pure-JAX reference (correctness oracle)
# ---------------------------------------------------------------------------
def _reference_forward(x_nchw, params, *, eps=1e-5):
    x = x_nchw
    for (w_oihw, gamma, beta) in params:
        y = jax.lax.conv_general_dilated(
            x, w_oihw, window_strides=(1, 1), padding=((1, 1), (1, 1)),
            dimension_numbers=("NCHW", "OIHW", "NCHW"),
            precision=jax.lax.Precision.HIGHEST)
        mean = jnp.mean(y, axis=(0, 2, 3), keepdims=True)
        var = jnp.mean(jnp.square(y - mean), axis=(0, 2, 3), keepdims=True)
        y = (y - mean) * jax.lax.rsqrt(var + eps)
        y = y * gamma.reshape(1, -1, 1, 1) + beta.reshape(1, -1, 1, 1)
        x = jnp.maximum(y, 0.0)
    N, C, H, W = x.shape
    xr = x.reshape(N, C, H // 2, 2, W // 2, 2)
    pooled = jnp.max(jnp.max(xr, axis=5), axis=3)
    return pooled, x


if __name__ == "__main__":
    in_features, out_features, num_conv_layers = 4, 8, 2
    H = W = 16
    key = jax.random.PRNGKey(0)
    key, xk = jax.random.split(key)
    x = jax.random.normal(xk, (2, in_features, H, W), jnp.float32)

    params = init_conv_block_params(key, in_features, out_features,
                                    num_conv_layers)
    packed = pack_conv_block_params(params, H, W)

    fwd = jax.jit(lambda inp: conv_block_forward(inp, packed))
    pooled, indices = fwd(x)
    jax.block_until_ready((pooled, indices))

    assert pooled.shape == (2, out_features, H // 2, W // 2)
    assert indices.shape == (2, out_features, H // 2, W // 2)
    assert pooled.dtype == jnp.float32 and indices.dtype == jnp.int32

    # Correctness vs the pure-JAX reference.  Tolerance is loose because the
    # kernel uses bf16 MXU conv operands (f32 accumulation / f32 BN stats)
    # while the reference runs HIGHEST-precision f32 convs.
    ref_pooled, ref_act = _reference_forward(x, params)
    assert jnp.allclose(pooled, ref_pooled, atol=5e-2, rtol=5e-2), float(
        jnp.max(jnp.abs(pooled - ref_pooled)))
    # Indices must point at the pooled maxima within each (H, W) plane.
    gathered = jnp.take_along_axis(
        ref_act.reshape(2, out_features, H * W),
        indices.reshape(2, out_features, -1), axis=-1).reshape(pooled.shape)
    assert jnp.allclose(gathered, pooled, atol=5e-2, rtol=5e-2)

    print("KERNEL_OK")
</pallas_src>

<mosaic_0001>
module attributes {stable_mosaic.version = 11 : i64} {
  func.func @_fused_conv_block_kernel(%arg0: i32, %arg1: memref<48x128xf32, #tpu.memory_space<vmem>>, %arg2: memref<3x128x128xbf16, #tpu.memory_space<vmem>>, %arg3: memref<1x128xf32, #tpu.memory_space<vmem>>, %arg4: memref<1x128xf32, #tpu.memory_space<vmem>>, %arg5: memref<3x128x128xbf16, #tpu.memory_space<vmem>>, %arg6: memref<1x128xf32, #tpu.memory_space<vmem>>, %arg7: memref<1x128xf32, #tpu.memory_space<vmem>>, %arg8: memref<128x128xf32, #tpu.memory_space<vmem>>, %arg9: memref<48x128xf32, #tpu.memory_space<vmem>>, %arg10: memref<48x128xi32, #tpu.memory_space<vmem>>, %arg11: memref<48x128xf32, #tpu.memory_space<vmem>>, %arg12: memref<48x128xi32, #tpu.memory_space<vmem>>) attributes {dimension_semantics = [#tpu.dimension_semantics<arbitrary>], iteration_bounds = array<i64: 1>, scalar_prefetch = 0 : i64, scratch_operands = 0 : i64, tpu.core_type = #tpu.core_type<tc>, window_params = [{pipeline_mode = #tpu.pipeline_mode<synchronous>, transform_indices = @transform_0, window_bounds = array<i64: 48, 128>}, {pipeline_mode = #tpu.pipeline_mode<synchronous>, transform_indices = @transform_1, window_bounds = array<i64: 3, 128, 128>}, {pipeline_mode = #tpu.pipeline_mode<synchronous>, transform_indices = @transform_2, window_bounds = array<i64: 1, 128>}, {pipeline_mode = #tpu.pipeline_mode<synchronous>, transform_indices = @transform_3, window_bounds = array<i64: 1, 128>}, {pipeline_mode = #tpu.pipeline_mode<synchronous>, transform_indices = @transform_4, window_bounds = array<i64: 3, 128, 128>}, {pipeline_mode = #tpu.pipeline_mode<synchronous>, transform_indices = @transform_5, window_bounds = array<i64: 1, 128>}, {pipeline_mode = #tpu.pipeline_mode<synchronous>, transform_indices = @transform_6, window_bounds = array<i64: 1, 128>}, {pipeline_mode = #tpu.pipeline_mode<synchronous>, transform_indices = @transform_7, window_bounds = array<i64: 128, 128>}, {pipeline_mode = #tpu.pipeline_mode<synchronous>, transform_indices = @transform_8, window_bounds = array<i64: 48, 128>}, {pipeline_mode = #tpu.pipeline_mode<synchronous>, transform_indices = @transform_9, window_bounds = array<i64: 48, 128>}, {pipeline_mode = #tpu.pipeline_mode<synchronous>, transform_indices = @transform_10, window_bounds = array<i64: 48, 128>}, {pipeline_mode = #tpu.pipeline_mode<synchronous>, transform_indices = @transform_11, window_bounds = array<i64: 48, 128>}]} {
    %c0 = arith.constant 0 : index
    %c0_0 = arith.constant 0 : index
    %0 = vector.load %arg9[%c0, %c0_0] : memref<48x128xf32, #tpu.memory_space<vmem>>, vector<48x128xf32>
    %c0_1 = arith.constant 0 : index
    %c0_2 = arith.constant 0 : index
    %1 = vector.load %arg8[%c0_1, %c0_2] : memref<128x128xf32, #tpu.memory_space<vmem>>, vector<128x128xf32>
    %c0_3 = arith.constant 0 : index
    %c0_4 = arith.constant 0 : index
    %2 = vector.load %arg1[%c0_3, %c0_4] : memref<48x128xf32, #tpu.memory_space<vmem>>, vector<48x128xf32>
    %c0_5 = arith.constant 0 : index
    %c0_6 = arith.constant 0 : index
    %3 = vector.load %arg3[%c0_5, %c0_6] : memref<1x128xf32, #tpu.memory_space<vmem>>, vector<1x128xf32>
    %c0_7 = arith.constant 0 : index
    %c0_8 = arith.constant 0 : index
    %4 = vector.load %arg4[%c0_7, %c0_8] : memref<1x128xf32, #tpu.memory_space<vmem>>, vector<1x128xf32>
    %5 = arith.truncf %2 : vector<48x128xf32> to vector<48x128xbf16>
    %c0_9 = arith.constant 0 : index
    %c0_10 = arith.constant 0 : index
    %c0_11 = arith.constant 0 : index
    %6 = vector.load %arg2[%c0_9, %c0_10, %c0_11] : memref<3x128x128xbf16, #tpu.memory_space<vmem>>, vector<1x128x128xbf16>
    %7 = vector.shape_cast %6 : vector<1x128x128xbf16> to vector<128x128xbf16>
    %cst = arith.constant dense<0.000000e+00> : vector<48x128xf32>
    %8 = tpu.matmul %5, %7, %cst {dimension_numbers = #tpu.dot_dimension_numbers<[1], [0], [0], [1], [0, 0, 1, 1], [], []>} : vector<48x128xbf16>, vector<128x128xbf16>, vector<48x128xf32> -> vector<48x128xf32>
    %c1 = arith.constant 1 : index
    %c0_12 = arith.constant 0 : index
    %c0_13 = arith.constant 0 : index
    %9 = vector.load %arg2[%c1, %c0_12, %c0_13] : memref<3x128x128xbf16, #tpu.memory_space<vmem>>, vector<1x128x128xbf16>
    %10 = vector.shape_cast %9 : vector<1x128x128xbf16> to vector<128x128xbf16>
    %cst_14 = arith.constant dense<0.000000e+00> : vector<48x128xf32>
    %11 = tpu.matmul %5, %10, %cst_14 {dimension_numbers = #tpu.dot_dimension_numbers<[1], [0], [0], [1], [0, 0, 1, 1], [], []>} : vector<48x128xbf16>, vector<128x128xbf16>, vector<48x128xf32> -> vector<48x128xf32>
    %c2 = arith.constant 2 : index
    %c0_15 = arith.constant 0 : index
    %c0_16 = arith.constant 0 : index
    %12 = vector.load %arg2[%c2, %c0_15, %c0_16] : memref<3x128x128xbf16, #tpu.memory_space<vmem>>, vector<1x128x128xbf16>
    %13 = vector.shape_cast %12 : vector<1x128x128xbf16> to vector<128x128xbf16>
    %cst_17 = arith.constant dense<0.000000e+00> : vector<48x128xf32>
    %14 = tpu.matmul %5, %13, %cst_17 {dimension_numbers = #tpu.dot_dimension_numbers<[1], [0], [0], [1], [0, 0, 1, 1], [], []>} : vector<48x128xbf16>, vector<128x128xbf16>, vector<48x128xf32> -> vector<48x128xf32>
    %c1_i32 = arith.constant 1 : i32
    %15 = tpu.dynamic_rotate %8 by %c1_i32 dim 0 : vector<48x128xf32>, i32 -> vector<48x128xf32>
    %16 = arith.addf %15, %11 : vector<48x128xf32>
    %c47_i32 = arith.constant 47 : i32
    %17 = tpu.dynamic_rotate %14 by %c47_i32 dim 0 : vector<48x128xf32>, i32 -> vector<48x128xf32>
    %18 = arith.addf %16, %17 : vector<48x128xf32>
    %19 = arith.mulf %18, %0 : vector<48x128xf32>
    %cst_18 = arith.constant dense<0.000000e+00> : vector<128xf32>
    %20 = vector.multi_reduction <add>, %19, %cst_18 [0] : vector<48x128xf32> to vector<128xf32>
    %21 = vector.shape_cast %20 : vector<128xf32> to vector<1x128xf32>
    %22 = arith.mulf %19, %19 : vector<48x128xf32>
    %cst_19 = arith.constant dense<0.000000e+00> : vector<128xf32>
    %23 = vector.multi_reduction <add>, %22, %cst_19 [0] : vector<48x128xf32> to vector<128xf32>
    %24 = vector.shape_cast %23 : vector<128xf32> to vector<1x128xf32>
    %cst_20 = arith.constant dense<0.000000e+00> : vector<1x128xf32>
    %25 = tpu.matmul %21, %1, %cst_20 {dimension_numbers = #tpu.dot_dimension_numbers<[1], [0], [0], [1], [0, 0, 1, 1], [], []>} : vector<1x128xf32>, vector<128x128xf32>, vector<1x128xf32> -> vector<1x128xf32>
    %cst_21 = arith.constant dense<0.000000e+00> : vector<1x128xf32>
    %26 = tpu.matmul %24, %1, %cst_21 {dimension_numbers = #tpu.dot_dimension_numbers<[1], [0], [0], [1], [0, 0, 1, 1], [], []>} : vector<1x128xf32>, vector<128x128xf32>, vector<1x128xf32> -> vector<1x128xf32>
    %cst_22 = arith.constant 0.001953125 : f32
    %27 = vector.broadcast %cst_22 : f32 to vector<1x128xf32>
    %28 = arith.mulf %25, %27 : vector<1x128xf32>
    %cst_23 = arith.constant 0.001953125 : f32
    %29 = vector.broadcast %cst_23 : f32 to vector<1x128xf32>
    %30 = arith.mulf %26, %29 : vector<1x128xf32>
    %31 = arith.mulf %28, %28 : vector<1x128xf32>
    %32 = arith.subf %30, %31 : vector<1x128xf32>
    %cst_24 = arith.constant 9.99999974E-6 : f32
    %33 = vector.broadcast %cst_24 : f32 to vector<1x128xf32>
    %34 = arith.addf %32, %33 : vector<1x128xf32>
    %35 = math.rsqrt %34 : vector<1x128xf32>
    %36 = arith.mulf %3, %35 : vector<1x128xf32>
    %37 = arith.mulf %28, %36 : vector<1x128xf32>
    %38 = arith.subf %4, %37 : vector<1x128xf32>
    %39 = vector.broadcast %36 : vector<1x128xf32> to vector<48x128xf32>
    %40 = arith.mulf %19, %39 : vector<48x128xf32>
    %41 = vector.broadcast %38 : vector<1x128xf32> to vector<48x128xf32>
    %42 = arith.addf %40, %41 : vector<48x128xf32>
    %cst_25 = arith.constant 0.000000e+00 : f32
    %43 = vector.broadcast %cst_25 : f32 to vector<48x128xf32>
    %44 = arith.maximumf %42, %43 : vector<48x128xf32>
    %45 = arith.mulf %44, %0 : vector<48x128xf32>
    %c0_26 = arith.constant 0 : index
    %c0_27 = arith.constant 0 : index
    %46 = vector.load %arg6[%c0_26, %c0_27] : memref<1x128xf32, #tpu.memory_space<vmem>>, vector<1x128xf32>
    %c0_28 = arith.constant 0 : index
    %c0_29 = arith.constant 0 : index
    %47 = vector.load %arg7[%c0_28, %c0_29] : memref<1x128xf32, #tpu.memory_space<vmem>>, vector<1x128xf32>
    %48 = arith.truncf %45 : vector<48x128xf32> to vector<48x128xbf16>
    %c0_30 = arith.constant 0 : index
    %c0_31 = arith.constant 0 : index
    %c0_32 = arith.constant 0 : index
    %49 = vector.load %arg5[%c0_30, %c0_31, %c0_32] : memref<3x128x128xbf16, #tpu.memory_space<vmem>>, vector<1x128x128xbf16>
    %50 = vector.shape_cast %49 : vector<1x128x128xbf16> to vector<128x128xbf16>
    %cst_33 = arith.constant dense<0.000000e+00> : vector<48x128xf32>
    %51 = tpu.matmul %48, %50, %cst_33 {dimension_numbers = #tpu.dot_dimension_numbers<[1], [0], [0], [1], [0, 0, 1, 1], [], []>} : vector<48x128xbf16>, vector<128x128xbf16>, vector<48x128xf32> -> vector<48x128xf32>
    %c1_34 = arith.constant 1 : index
    %c0_35 = arith.constant 0 : index
    %c0_36 = arith.constant 0 : index
    %52 = vector.load %arg5[%c1_34, %c0_35, %c0_36] : memref<3x128x128xbf16, #tpu.memory_space<vmem>>, vector<1x128x128xbf16>
    %53 = vector.shape_cast %52 : vector<1x128x128xbf16> to vector<128x128xbf16>
    %cst_37 = arith.constant dense<0.000000e+00> : vector<48x128xf32>
    %54 = tpu.matmul %48, %53, %cst_37 {dimension_numbers = #tpu.dot_dimension_numbers<[1], [0], [0], [1], [0, 0, 1, 1], [], []>} : vector<48x128xbf16>, vector<128x128xbf16>, vector<48x128xf32> -> vector<48x128xf32>
    %c2_38 = arith.constant 2 : index
    %c0_39 = arith.constant 0 : index
    %c0_40 = arith.constant 0 : index
    %55 = vector.load %arg5[%c2_38, %c0_39, %c0_40] : memref<3x128x128xbf16, #tpu.memory_space<vmem>>, vector<1x128x128xbf16>
    %56 = vector.shape_cast %55 : vector<1x128x128xbf16> to vector<128x128xbf16>
    %cst_41 = arith.constant dense<0.000000e+00> : vector<48x128xf32>
    %57 = tpu.matmul %48, %56, %cst_41 {dimension_numbers = #tpu.dot_dimension_numbers<[1], [0], [0], [1], [0, 0, 1, 1], [], []>} : vector<48x128xbf16>, vector<128x128xbf16>, vector<48x128xf32> -> vector<48x128xf32>
    %c1_i32_42 = arith.constant 1 : i32
    %58 = tpu.dynamic_rotate %51 by %c1_i32_42 dim 0 : vector<48x128xf32>, i32 -> vector<48x128xf32>
    %59 = arith.addf %58, %54 : vector<48x128xf32>
    %c47_i32_43 = arith.constant 47 : i32
    %60 = tpu.dynamic_rotate %57 by %c47_i32_43 dim 0 : vector<48x128xf32>, i32 -> vector<48x128xf32>
    %61 = arith.addf %59, %60 : vector<48x128xf32>
    %62 = arith.mulf %61, %0 : vector<48x128xf32>
    %cst_44 = arith.constant dense<0.000000e+00> : vector<128xf32>
    %63 = vector.multi_reduction <add>, %62, %cst_44 [0] : vector<48x128xf32> to vector<128xf32>
    %64 = vector.shape_cast %63 : vector<128xf32> to vector<1x128xf32>
    %65 = arith.mulf %62, %62 : vector<48x128xf32>
    %cst_45 = arith.constant dense<0.000000e+00> : vector<128xf32>
    %66 = vector.multi_reduction <add>, %65, %cst_45 [0] : vector<48x128xf32> to vector<128xf32>
    %67 = vector.shape_cast %66 : vector<128xf32> to vector<1x128xf32>
    %cst_46 = arith.constant dense<0.000000e+00> : vector<1x128xf32>
    %68 = tpu.matmul %64, %1, %cst_46 {dimension_numbers = #tpu.dot_dimension_numbers<[1], [0], [0], [1], [0, 0, 1, 1], [], []>} : vector<1x128xf32>, vector<128x128xf32>, vector<1x128xf32> -> vector<1x128xf32>
    %cst_47 = arith.constant dense<0.000000e+00> : vector<1x128xf32>
    %69 = tpu.matmul %67, %1, %cst_47 {dimension_numbers = #tpu.dot_dimension_numbers<[1], [0], [0], [1], [0, 0, 1, 1], [], []>} : vector<1x128xf32>, vector<128x128xf32>, vector<1x128xf32> -> vector<1x128xf32>
    %cst_48 = arith.constant 0.001953125 : f32
    %70 = vector.broadcast %cst_48 : f32 to vector<1x128xf32>
    %71 = arith.mulf %68, %70 : vector<1x128xf32>
    %cst_49 = arith.constant 0.001953125 : f32
    %72 = vector.broadcast %cst_49 : f32 to vector<1x128xf32>
    %73 = arith.mulf %69, %72 : vector<1x128xf32>
    %74 = arith.mulf %71, %71 : vector<1x128xf32>
    %75 = arith.subf %73, %74 : vector<1x128xf32>
    %cst_50 = arith.constant 9.99999974E-6 : f32
    %76 = vector.broadcast %cst_50 : f32 to vector<1x128xf32>
    %77 = arith.addf %75, %76 : vector<1x128xf32>
    %78 = math.rsqrt %77 : vector<1x128xf32>
    %79 = arith.mulf %46, %78 : vector<1x128xf32>
    %80 = arith.mulf %71, %79 : vector<1x128xf32>
    %81 = arith.subf %47, %80 : vector<1x128xf32>
    %82 = vector.broadcast %79 : vector<1x128xf32> to vector<48x128xf32>
    %83 = arith.mulf %62, %82 : vector<48x128xf32>
    %84 = vector.broadcast %81 : vector<1x128xf32> to vector<48x128xf32>
    %85 = arith.addf %83, %84 : vector<48x128xf32>
    %cst_51 = arith.constant 0.000000e+00 : f32
    %86 = vector.broadcast %cst_51 : f32 to vector<48x128xf32>
    %87 = arith.maximumf %85, %86 : vector<48x128xf32>
    %c47_i32_52 = arith.constant 47 : i32
    %88 = tpu.dynamic_rotate %87 by %c47_i32_52 dim 0 : vector<48x128xf32>, i32 -> vector<48x128xf32>
    %c120_i32 = arith.constant 120 : i32
    %89 = tpu.dynamic_rotate %87 by %c120_i32 dim 1 : vector<48x128xf32>, i32 -> vector<48x128xf32>
    %c120_i32_53 = arith.constant 120 : i32
    %90 = tpu.dynamic_rotate %88 by %c120_i32_53 dim 1 : vector<48x128xf32>, i32 -> vector<48x128xf32>
    %c0_54 = arith.constant 0 : index
    %c0_55 = arith.constant 0 : index
    %91 = vector.load %arg10[%c0_54, %c0_55] : memref<48x128xi32, #tpu.memory_space<vmem>>, vector<48x128xi32>
    %92 = arith.cmpf ogt, %89, %87 : vector<48x128xf32>
    %c1_i32_56 = arith.constant 1 : i32
    %93 = vector.broadcast %c1_i32_56 : i32 to vector<48x128xi32>
    %94 = arith.addi %91, %93 : vector<48x128xi32>
    %95 = arith.select %92, %94, %91 : vector<48x128xi1>, vector<48x128xi32>
    %96 = arith.select %92, %89, %87 : vector<48x128xi1>, vector<48x128xf32>
    %97 = arith.cmpf ogt, %88, %96 : vector<48x128xf32>
    %c16_i32 = arith.constant 16 : i32
    %98 = vector.broadcast %c16_i32 : i32 to vector<48x128xi32>
    %99 = arith.addi %91, %98 : vector<48x128xi32>
    %100 = arith.select %97, %99, %95 : vector<48x128xi1>, vector<48x128xi32>
    %101 = arith.select %97, %88, %96 : vector<48x128xi1>, vector<48x128xf32>
    %102 = arith.cmpf ogt, %90, %101 : vector<48x128xf32>
    %c17_i32 = arith.constant 17 : i32
    %103 = vector.broadcast %c17_i32 : i32 to vector<48x128xi32>
    %104 = arith.addi %91, %103 : vector<48x128xi32>
    %105 = arith.select %102, %104, %100 : vector<48x128xi1>, vector<48x128xi32>
    %106 = arith.select %102, %90, %101 : vector<48x128xi1>, vector<48x128xf32>
    %c0_57 = arith.constant 0 : index
    %c0_58 = arith.constant 0 : index
    %107 = vector.load %arg11[%c0_57, %c0_58] : memref<48x128xf32, #tpu.memory_space<vmem>>, vector<48x128xf32>
    tpu.vector_store %arg11[%c0_57, %c0_58], %106 {strides = array<i32>} : memref<48x128xf32, #tpu.memory_space<vmem>>, vector<48x128xf32>,
    %c0_59 = arith.constant 0 : index
    %c0_60 = arith.constant 0 : index
    %108 = vector.load %arg12[%c0_59, %c0_60] : memref<48x128xi32, #tpu.memory_space<vmem>>, vector<48x128xi32>
    tpu.vector_store %arg12[%c0_59, %c0_60], %105 {strides = array<i32>} : memref<48x128xi32, #tpu.memory_space<vmem>>, vector<48x128xi32>,
    return
  }
  func.func @transform_0(%arg0: i32) -> (i32, i32) {
    %c0_i32 = arith.constant 0 : i32
    %c0_i32_0 = arith.constant 0 : i32
    %c0_i32_1 = arith.constant 0 : i32
    return %c0_i32, %c0_i32_0 : i32, i32
  }
  func.func @transform_1(%arg0: i32) -> (i32, i32, i32) {
    %c0_i32 = arith.constant 0 : i32
    %c0_i32_0 = arith.constant 0 : i32
    %c0_i32_1 = arith.constant 0 : i32
    %c0_i32_2 = arith.constant 0 : i32
    return %c0_i32, %c0_i32_0, %c0_i32_1 : i32, i32, i32
  }
  func.func @transform_2(%arg0: i32) -> (i32, i32) {
    %c0_i32 = arith.constant 0 : i32
    %c0_i32_0 = arith.constant 0 : i32
    %c0_i32_1 = arith.constant 0 : i32
    return %c0_i32, %c0_i32_0 : i32, i32
  }
  func.func @transform_3(%arg0: i32) -> (i32, i32) {
    %c0_i32 = arith.constant 0 : i32
    %c0_i32_0 = arith.constant 0 : i32
    %c0_i32_1 = arith.constant 0 : i32
    return %c0_i32, %c0_i32_0 : i32, i32
  }
  func.func @transform_4(%arg0: i32) -> (i32, i32, i32) {
    %c0_i32 = arith.constant 0 : i32
    %c0_i32_0 = arith.constant 0 : i32
    %c0_i32_1 = arith.constant 0 : i32
    %c0_i32_2 = arith.constant 0 : i32
    return %c0_i32, %c0_i32_0, %c0_i32_1 : i32, i32, i32
  }
  func.func @transform_5(%arg0: i32) -> (i32, i32) {
    %c0_i32 = arith.constant 0 : i32
    %c0_i32_0 = arith.constant 0 : i32
    %c0_i32_1 = arith.constant 0 : i32
    return %c0_i32, %c0_i32_0 : i32, i32
  }
  func.func @transform_6(%arg0: i32) -> (i32, i32) {
    %c0_i32 = arith.constant 0 : i32
    %c0_i32_0 = arith.constant 0 : i32
    %c0_i32_1 = arith.constant 0 : i32
    return %c0_i32, %c0_i32_0 : i32, i32
  }
  func.func @transform_7(%arg0: i32) -> (i32, i32) {
    %c0_i32 = arith.constant 0 : i32
    %c0_i32_0 = arith.constant 0 : i32
    %c0_i32_1 = arith.constant 0 : i32
    return %c0_i32, %c0_i32_0 : i32, i32
  }
  func.func @transform_8(%arg0: i32) -> (i32, i32) {
    %c0_i32 = arith.constant 0 : i32
    %c0_i32_0 = arith.constant 0 : i32
    %c0_i32_1 = arith.constant 0 : i32
    return %c0_i32, %c0_i32_0 : i32, i32
  }
  func.func @transform_9(%arg0: i32) -> (i32, i32) {
    %c0_i32 = arith.constant 0 : i32
    %c0_i32_0 = arith.constant 0 : i32
    %c0_i32_1 = arith.constant 0 : i32
    return %c0_i32, %c0_i32_0 : i32, i32
  }
  func.func @transform_10(%arg0: i32) -> (i32, i32) {
    %c0_i32 = arith.constant 0 : i32
    %c0_i32_0 = arith.constant 0 : i32
    %c0_i32_1 = arith.constant 0 : i32
    return %c0_i32, %c0_i32_0 : i32, i32
  }
  func.func @transform_11(%arg0: i32) -> (i32, i32) {
    %c0_i32 = arith.constant 0 : i32
    %c0_i32_0 = arith.constant 0 : i32
    %c0_i32_1 = arith.constant 0 : i32
    return %c0_i32, %c0_i32_0 : i32, i32
  }
}

</mosaic_0001>

<bundles_post_ra>
// kernel: _lambda_.1
= control target key start
LH: loop header
LB: loop body
LE: loop exit
PB: predicated region body
PF: predicated region fallthrough
CT: control target
= control target key end

     0   :  { %v2154_v0 = vmov 0.0   ;;  %vm2155_vm0 = vmmov 0   ;;  %v2156_v37 = vmov 0.0|0.0   ;;  %v442_v59 = vlaneseq  ;;  %s2939_s1 = inlined_call_operand.vmem [shape: bf16[3,128,128], index: 1, kind: input, shape index: {}]   ;;  %s2940_s0 = inlined_call_operand.vmem [shape: f32[48,128], index: 0, kind: input, shape index: {}]   ;;  %s2941_s7 = inlined_call_operand.vmem [shape: f32[128,128], index: 7, kind: input, shape index: {}]   ;;  %s2942_s8 = inlined_call_operand.vmem [shape: f32[48,128], index: 8, kind: input, shape index: {}]   ;;  %s2943_s4 = inlined_call_operand.vmem [shape: bf16[3,128,128], index: 4, kind: input, shape index: {}]   ;;  %s2944_s2 = inlined_call_operand.vmem [shape: f32[1,128], index: 2, kind: input, shape index: {}, may-alias: {2,5}]   ;;  %s2945_s3 = inlined_call_operand.vmem [shape: f32[1,128], index: 3, kind: input, shape index: {}, may-alias: {3,6}]   ;;  %s2946_s5 = inlined_call_operand.vmem [shape: f32[1,128], index: 5, kind: input, shape index: {}, may-alias: {2,5}]   ;;  %s2947_s6 = inlined_call_operand.vmem [shape: f32[1,128], index: 6, kind: input, shape index: {}, may-alias: {3,6}]   ;;  %s2948_s9 = inlined_call_operand.vmem [shape: s32[48,128], index: 9, kind: input, shape index: {}]   ;;  %s2949_s10 = inlined_call_operand.vmem [shape: f32[48,128], index: 10, kind: output, shape index: {0}]   ;;  %s2950_s11 = inlined_call_operand.vmem [shape: s32[48,128], index: 11, kind: output, shape index: {1}]  }
   0x1   :  { %1694 = vmatprep.subr.bf16.mxu0 %v2154_v0  ;;  %v2102_v1 = vld [vmem:[%s2939_s1] sm:$0xff]   ;;  %1722 = vmatprep.subr.bf16.mxu1 %v2154_v0  ;;  %v2104_v3 = vld [vmem:[%s2939_s1 + $0x8] sm:$0xff]   ;;  %v2106_v5 = vld [vmem:[%s2939_s1 + $0x10] sm:$0xff]  }
   0x2   :  { %v2103_v2 = vld [vmem:[%s2939_s1 + $0x40] sm:$0xff]   ;;  %1710 = vmatprep.mubr.msk.bf16.mxu0 %vm2155_vm0, %v2154_v0  ;;  %1738 = vmatprep.mubr.msk.bf16.mxu1 %vm2155_vm0, %v2154_v0  ;;  %v2105_v4 = vld [vmem:[%s2939_s1 + $0x48] sm:$0xff]   ;;  %v2107_v6 = vld [vmem:[%s2939_s1 + $0x50] sm:$0xff]   ;;  %v2452_v60 = vshrl.u32 %v442_v59, 7 }
   0x3   :  { %1695 = vmatpush3.bf16.msra.mxu0 %v2102_v1  ;;  %1723 = vmatpush3.bf16.msra.mxu1 %v2103_v2  ;;  %v2108_v7 = vld [vmem:[%s2939_s1 + $0x18] sm:$0xff]   ;;  %v2110_v9 = vld [vmem:[%s2939_s1 + $0x20] sm:$0xff]   ;;  %v2112_v11 = vld [vmem:[%s2939_s1 + $0x28] sm:$0xff]  }
   0x4   :  { %1696 = vmatprep.subr.bf16.mxu0 %v2154_v0  ;;  %1724 = vmatprep.subr.bf16.mxu1 %v2154_v0  ;;  %v2109_v8 = vld [vmem:[%s2939_s1 + $0x58] sm:$0xff]   ;;  %v2111_v10 = vld [vmem:[%s2939_s1 + $0x60] sm:$0xff]   ;;  %v2113_v12 = vld [vmem:[%s2939_s1 + $0x68] sm:$0xff]   ;;  %vm444_vm1 = vcmp.lt.s32.totalorder %v2452_v60, 1  ;;  %vm463_vm2 = vcmp.lt.s32.totalorder %v2452_v60, 7 }
   0x5   :  { %v2114_v13 = vld [vmem:[%s2939_s1 + $0x30] sm:$0xff]   ;;  %v2116_v15 = vld [vmem:[%s2939_s1 + $0x38] sm:$0xff]   ;;  %v60_v16 = vld [vmem:[%s2940_s0] sm:$0xff] }
   0x6   :  { %v2115_v14 = vld [vmem:[%s2939_s1 + $0x70] sm:$0xff]   ;;  %v61_v17 = vld [vmem:[%s2940_s0 + $0x8] sm:$0xff]  ;;  %v2117_v18 = vld [vmem:[%s2939_s1 + $0x78] sm:$0xff]  }
   0x7   :  { %1697 = vmatpush3.bf16.msra.mxu0 %v2104_v3  ;;  %1725 = vmatpush3.bf16.msra.mxu1 %v2105_v4  ;;  %v68_v19 = vpack.c.bf16 %v61_v17, %v60_v16  ;;  %v2118_v20 = vld [vmem:[%s2939_s1 + $0x80] sm:$0xff]   ;;  %v2119_v21 = vld [vmem:[%s2939_s1 + $0x88] sm:$0xff]   ;;  %v62_v22 = vld [vmem:[%s2940_s0 + $0x10] sm:$0xff] }
   0x8   :  { %1698 = vmatprep.subr.bf16.mxu0 %v2154_v0  ;;  %1726 = vmatprep.subr.bf16.mxu1 %v2154_v0  ;;  %v63_v23 = vld [vmem:[%s2940_s0 + $0x18] sm:$0xff]  ;;  %v2120_v25 = vld [vmem:[%s2939_s1 + $0x90] sm:$0xff]   ;;  %v64_v27 = vld [vmem:[%s2940_s0 + $0x20] sm:$0xff] }
   0x9   :  { %v69_v24 = vpack.c.bf16 %v63_v23, %v62_v22  ;;  %v2121_v26 = vld [vmem:[%s2939_s1 + $0x98] sm:$0xff]   ;;  %v65_v28 = vld [vmem:[%s2940_s0 + $0x28] sm:$0xff]  ;;  %v2122_v30 = vld [vmem:[%s2939_s1 + $0xa0] sm:$0xff]  }
   0xa   :  { %v70_v29 = vpack.c.bf16 %v65_v28, %v64_v27  ;;  %v2123_v31 = vld [vmem:[%s2939_s1 + $0xa8] sm:$0xff]   ;;  %v2124_v32 = vld [vmem:[%s2939_s1 + $0xb0] sm:$0xff]   ;;  %v2125_v33 = vld [vmem:[%s2939_s1 + $0xb8] sm:$0xff]  }
   0xb   :  { %1699 = vmatpush3.bf16.msra.mxu0 %v2106_v5  ;;  %1727 = vmatpush3.bf16.msra.mxu1 %v2107_v6  ;;  %v44_v34 = vld [vmem:[%s2941_s7] sm:$0xff]  ;;  %v45_v35 = vld [vmem:[%s2941_s7 + $0x8] sm:$0xff]  ;;  %v46_v38 = vld [vmem:[%s2941_s7 + $0x10] sm:$0xff] }
   0xc   :  { %1700 = vmatprep.subr.bf16.mxu0 %v2154_v0  ;;  %1728 = vmatprep.subr.bf16.mxu1 %v2154_v0  ;;  %v2360_v36 = vpack.c.bf16 %v45_v35, %v44_v34  ;;  %v47_v39 = vld [vmem:[%s2941_s7 + $0x18] sm:$0xff]  ;;  %v48_v41 = vld [vmem:[%s2941_s7 + $0x20] sm:$0xff]  ;;  %v49_v42 = vld [vmem:[%s2941_s7 + $0x28] sm:$0xff] }
   0xd   :  { %v2374_v40 = vpack.c.bf16 %v47_v39, %v46_v38  ;;  %v2386_v43 = vpack.c.bf16 %v49_v42, %v48_v41  ;;  %v50_v44 = vld [vmem:[%s2941_s7 + $0x30] sm:$0xff]  ;;  %v51_v45 = vld [vmem:[%s2941_s7 + $0x38] sm:$0xff]  ;;  %v52_v47 = vld [vmem:[%s2941_s7 + $0x40] sm:$0xff] }
   0xe   :  { %v2398_v46 = vpack.c.bf16 %v51_v45, %v50_v44  ;;  %v53_v48 = vld [vmem:[%s2941_s7 + $0x48] sm:$0xff]  ;;  %v54_v50 = vld [vmem:[%s2941_s7 + $0x50] sm:$0xff]  ;;  %v55_v51 = vld [vmem:[%s2941_s7 + $0x58] sm:$0xff] }
   0xf   :  { %1701 = vmatpush3.bf16.msra.mxu0 %v2108_v7  ;;  %1729 = vmatpush3.bf16.msra.mxu1 %v2109_v8  ;;  %v2410_v49 = vpack.c.bf16 %v53_v48, %v52_v47  ;;  %v2422_v52 = vpack.c.bf16 %v55_v51, %v54_v50  ;;  %v56_v53 = vld [vmem:[%s2941_s7 + $0x60] sm:$0xff]  ;;  %v57_v54 = vld [vmem:[%s2941_s7 + $0x68] sm:$0xff]  ;;  %v58_v55 = vld [vmem:[%s2941_s7 + $0x70] sm:$0xff] }
  0x10   :  { %1702 = vmatprep.subr.bf16.mxu0 %v2154_v0  ;;  %1730 = vmatprep.subr.bf16.mxu1 %v2154_v0  ;;  %v2437_v56 = vpack.c.bf16 %v57_v54, %v56_v53  ;;  %v59_v57 = vld [vmem:[%s2941_s7 + $0x78] sm:$0xff] }
  0x11   :  { %v2444_v58 = vpack.c.bf16 %v59_v57, %v58_v55 }
  0x13   :  { %1703 = vmatpush3.bf16.msra.mxu0 %v2110_v9  ;;  %1731 = vmatpush3.bf16.msra.mxu1 %v2111_v10 }
  0x14   :  { %1704 = vmatprep.subr.bf16.mxu0 %v2154_v0  ;;  %1732 = vmatprep.subr.bf16.mxu1 %v2154_v0 }
  0x17   :  { %1705 = vmatpush3.bf16.msra.mxu0 %v2112_v11  ;;  %1733 = vmatpush3.bf16.msra.mxu1 %v2113_v12 }
  0x18   :  { %1706 = vmatprep.subr.bf16.mxu0 %v2154_v0  ;;  %1734 = vmatprep.subr.bf16.mxu1 %v2154_v0 }
  0x1b   :  { %1707 = vmatpush3.bf16.msra.mxu0 %v2114_v13  ;;  %1735 = vmatpush3.bf16.msra.mxu1 %v2115_v14 }
  0x1c   :  { %1708 = vmatprep.subr.bf16.mxu0 %v2154_v0  ;;  %1736 = vmatprep.subr.bf16.mxu1 %v2154_v0 }
  0x1f   :  { %1709 = vmatpush3.bf16.msra.mxu0 %v2116_v15  ;;  %1737 = vmatpush3.bf16.msra.mxu1 %v2117_v18 }
  0x20   :  { %1750 = vmatprep.subr.bf16.mxu0 %v2154_v0  ;;  %2002 = vmatprep.subr.bf16.mxu1 %v2156_v37 }
  0x22   :  { %1711 = vmatmul.mubr.bf16.vlgmr.msra.gmra.mrb[0].mxu0 %v68_v19  ;;  %1739 = vmatmul.mubr.bf16.vlgmr.msra.gmra.mrb[0].mxu1 %v68_v19 }
  0x23   :  { %1751 = vmatpush3.bf16.msra.mxu0 %v2118_v20  ;;  %1714 = vmatprep.mubr.msk.bf16.mxu0 %vm2155_vm0, %v2154_v0 }
  0x24   :  { %1752 = vmatprep.subr.bf16.mxu0 %v2154_v0  ;;  %1742 = vmatprep.mubr.msk.bf16.mxu1 %vm2155_vm0, %v2154_v0 }
  0x25   :  { %2004 = vmatpush3.bf16.msra.mxu1 %v2360_v36 }
  0x26   :  { %2005 = vmatprep.subr.bf16.mxu1 %v2156_v37 }
  0x27   :  { %1753 = vmatpush3.bf16.msra.mxu0 %v2119_v21 }
  0x28   :  { %1754 = vmatprep.subr.bf16.mxu0 %v2154_v0 }
  0x29   :  { %2007 = vmatpush3.bf16.msra.mxu1 %v2374_v40 }
  0x2a   :  { %1715 = vmatmul.mubr.bf16.gmra.mrb[4].mxu0 %v69_v24  ;;  %1743 = vmatmul.mubr.bf16.gmra.mrb[4].mxu1 %v69_v24 }
  0x2b   :  { %1755 = vmatpush3.bf16.msra.mxu0 %v2120_v25  ;;  %1718 = vmatprep.mubr.msk.bf16.mxu0 %vm2155_vm0, %v2154_v0 }
  0x2c   :  { %1756 = vmatprep.subr.bf16.mxu0 %v2154_v0  ;;  %1746 = vmatprep.mubr.msk.bf16.mxu1 %vm2155_vm0, %v2154_v0 }
  0x2d   :  { %2008 = vmatprep.subr.bf16.mxu1 %v2156_v37 }
  0x2e   :  { %2010 = vmatpush3.bf16.msra.mxu1 %v2386_v43 }
  0x2f   :  { %1757 = vmatpush3.bf16.msra.mxu0 %v2121_v26  ;;  %2011 = vmatprep.subr.bf16.mxu1 %v2156_v37 }
  0x30   :  { %1758 = vmatprep.subr.bf16.mxu0 %v2154_v0 }
  0x32   :  { %1719 = vmatmul.mubr.bf16.gmra.mrb[8].mxu0 %v70_v29  ;;  %1747 = vmatmul.mubr.bf16.gmra.mrb[8].mxu1 %v70_v29 }
  0x33   :  { %1759 = vmatpush3.bf16.msra.mxu0 %v2122_v30  ;;  %1766 = vmatprep.mubr.msk.bf16.mxu0 %vm2155_vm0, %v2154_v0 }
  0x34   :  { %1760 = vmatprep.subr.bf16.mxu0 %v2154_v0  ;;  %1810 = vmatprep.mubr.msk.f32.mxu1 %vm2155_vm0, %v2154_v0 }
  0x35   :  { %2013 = vmatpush3.bf16.msra.mxu1 %v2398_v46 }
  0x36   :  { %2014 = vmatprep.subr.bf16.mxu1 %v2156_v37 }
  0x37   :  { %1761 = vmatpush3.bf16.msra.mxu0 %v2123_v31 }
  0x38   :  { %1762 = vmatprep.subr.bf16.mxu0 %v2154_v0 }
  0x39   :  { %2016 = vmatpush3.bf16.msra.mxu1 %v2410_v49 }
  0x3a   :  { %2017 = vmatprep.subr.bf16.mxu1 %v2156_v37 }
  0x3b   :  { %1763 = vmatpush3.bf16.msra.mxu0 %v2124_v32 }
  0x3c   :  { %1764 = vmatprep.subr.bf16.mxu0 %v2154_v0 }
  0x3d   :  { %2019 = vmatpush3.bf16.msra.mxu1 %v2422_v52 }
  0x3e   :  { %2020 = vmatprep.subr.bf16.mxu1 %v2156_v37 }
  0x3f   :  { %1765 = vmatpush3.bf16.msra.mxu0 %v2125_v33 }
  0x40   :  { %2026 = vmatprep.subr.bf16.mxu0 %v2156_v37 }
  0x41   :  { %2022 = vmatpush3.bf16.msra.mxu1 %v2437_v56 }
  0x42   :  { %1767 = vmatmul.mubr.bf16.vlgmr.msra.gmra.mrb[12].mxu0 %v68_v19  ;;  %2023 = vmatprep.subr.bf16.mxu1 %v2156_v37 }
  0x43   :  { %1770 = vmatprep.mubr.msk.bf16.mxu0 %vm2155_vm0, %v2154_v0  ;;  %2028 = vmatpush3.bf16.msra.mxu0 %v2360_v36 }
  0x44   :  { %2029 = vmatprep.subr.bf16.mxu0 %v2156_v37 }
  0x45   :  { %2025 = vmatpush3.bf16.msra.mxu1 %v2444_v58 }
  0x46   :  { %1848 = vmatprep.subr.bf16.mxu1 %v2154_v0 }
  0x47   :  { %2031 = vmatpush3.bf16.msra.mxu0 %v2374_v40 }
  0x48   :  { %2032 = vmatprep.subr.bf16.mxu0 %v2156_v37 }
  0x4a   :  { %1771 = vmatmul.mubr.bf16.gmra.mrb[16].mxu0 %v69_v24 }
  0x4b   :  { %1774 = vmatprep.mubr.msk.bf16.mxu0 %vm2155_vm0, %v2154_v0  ;;  %2034 = vmatpush3.bf16.msra.mxu0 %v2386_v43 }
  0x4c   :  { %2035 = vmatprep.subr.bf16.mxu0 %v2156_v37 }
  0x4f   :  { %2037 = vmatpush3.bf16.msra.mxu0 %v2398_v46 }
  0x50   :  { %2038 = vmatprep.subr.bf16.mxu0 %v2156_v37 }
  0x52   :  { %1775 = vmatmul.mubr.bf16.gmra.mrb[20].mxu0 %v70_v29 }
  0x53   :  { %1845 = vmatprep.mubr.msk.f32.mxu0 %vm2155_vm0, %v2154_v0  ;;  %2040 = vmatpush3.bf16.msra.mxu0 %v2410_v49 }
  0x54   :  { %2041 = vmatprep.subr.bf16.mxu0 %v2156_v37 }
  0x57   :  { %2043 = vmatpush3.bf16.msra.mxu0 %v2422_v52 }
  0x58   :  { %2044 = vmatprep.subr.bf16.mxu0 %v2156_v37 }
  0x5b   :  { %2046 = vmatpush3.bf16.msra.mxu0 %v2437_v56 }
  0x5c   :  { %2047 = vmatprep.subr.bf16.mxu0 %v2156_v37 }
  0x5f   :  { %2049 = vmatpush3.bf16.msra.mxu0 %v2444_v58 }
  0x60   :  { %1876 = vmatprep.subr.bf16.mxu0 %v2154_v0 }
  0xf5   :  { %v169_v61 = vpop.f32.mrb[0].mxu0  ;;  %v291_v1 = vpop.f32.mrb[0].mxu1 }
  0xf6   :  { %v436_v62 = vrot.slane %v169_v61, 7  ;;  %v1712_v63 = vpop.f32.mrb[1].mxu0  ;;  %v1740_v3 = vpop.f32.mrb[1].mxu1  ;;  %v2473_v61 = vld [vmem:[%s2942_s8] sm:$0xff] }
  0xf7   :  { %v172_v2 = vpop.f32.mrb[2].mxu0  ;;  %v294_v6 = vpop.f32.mrb[2].mxu1  ;;  %v2478_v63 = vld [vmem:[%s2942_s8 + $0x8] sm:$0xff] }
  0xf8   :  { %v437_v4 = vrot.slane %v172_v2, 7  ;;  %v1713_v5 = vpop.f32.mrb[3].mxu0  ;;  %v1741_v7 = vpop.f32.mrb[3].mxu1 }
  0xfa   :  { %v449_v8 = vsel %vm444_vm1, %v436_v62, %v437_v4 }
  0xfb   :  { %v452_v9 = vadd.f32 %v449_v8, %v294_v6  ;;  %v2488_v6 = vld [vmem:[%s2942_s8 + $0x10] sm:$0xff] }
  0xfd   :  { %v177_v10 = vpop.f32.mrb[4].mxu0  ;;  %v299_v12 = vpop.f32.mrb[4].mxu1 }
  0xfe   :  { %v438_v11 = vrot.slane %v177_v10, 7  ;;  %v1716_v13 = vpop.f32.mrb[5].mxu0  ;;  %v1744_v15 = vpop.f32.mrb[5].mxu1 }
  0xff   :  { %v180_v14 = vpop.f32.mrb[6].mxu0  ;;  %v302_v19 = vpop.f32.mrb[6].mxu1 }
 0x100   :  { %v448_v16 = vsel %vm444_vm1, %v437_v4, %v438_v11  ;;  %v439_v17 = vrot.slane %v180_v14, 7  ;;  %v1717_v18 = vpop.f32.mrb[7].mxu0  ;;  %v1745_v21 = vpop.f32.mrb[7].mxu1 }
 0x101   :  { %v453_v20 = vadd.f32 %v448_v16, %v299_v12 }
 0x102   :  { %v447_v22 = vsel %vm444_vm1, %v438_v11, %v439_v17 }
 0x103   :  { %v454_v23 = vadd.f32 %v447_v22, %v302_v19 }
 0x105   :  { %v185_v24 = vpop.f32.mrb[8].mxu0  ;;  %v307_v27 = vpop.f32.mrb[8].mxu1 }
 0x106   :  { %v440_v25 = vrot.slane %v185_v24, 7  ;;  %v1720_v26 = vpop.f32.mrb[9].mxu0  ;;  %v1748_v29 = vpop.f32.mrb[9].mxu1 }
 0x107   :  { %v188_v28 = vpop.f32.mrb[10].mxu0  ;;  %v310_v33 = vpop.f32.mrb[10].mxu1  ;;  %v2516_v26 = vld [vmem:[%s2942_s8 + $0x20] sm:$0xff] }
 0x108   :  { %v441_v30 = vrot.slane %v188_v28, 7  ;;  %v446_v31 = vsel %vm444_vm1, %v439_v17, %v440_v25  ;;  %v1721_v32 = vpop.f32.mrb[11].mxu0  ;;  %v1749_v35 = vpop.f32.mrb[11].mxu1 }
 0x109   :  { %v455_v34 = vadd.f32 %v446_v31, %v307_v27  ;;  %v2521_v27 = vld [vmem:[%s2942_s8 + $0x28] sm:$0xff] }
 0x10a   :  { %v450_v38 = vsel %vm444_vm1, %v441_v30, %v436_v62  ;;  %v445_v39 = vsel %vm444_vm1, %v440_v25, %v441_v30 }
 0x10b   :  { %v451_v41 = vadd.f32 %v450_v38, %v291_v1  ;;  %v456_v42 = vadd.f32 %v445_v39, %v310_v33 }
 0x115   :  { %v413_v44 = vpop.f32.mrb[12].mxu0 }
 0x116   :  { %v1768_v45 = vpop.f32.mrb[13].mxu0  ;;  %v457_v48 = vrot.slane %v413_v44, 1 }
 0x117   :  { %v416_v47 = vpop.f32.mrb[14].mxu0 }
 0x118   :  { %v458_v50 = vrot.slane %v416_v47, 1  ;;  %v1769_v51 = vpop.f32.mrb[15].mxu0 }
 0x11a   :  { %v468_v53 = vsel %vm463_vm2, %v457_v48, %v458_v50 }
 0x11b   :  { %v470_v54 = vadd.f32 %v468_v53, %v451_v41 }
 0x11d   :  { %v421_v55 = vpop.f32.mrb[16].mxu0  ;;  %v2483_v5 = vmul.f32 %v470_v54, %v2473_v61 }
 0x11e   :  { %v459_v57 = vrot.slane %v421_v55, 1  ;;  %v1772_v59 = vpop.f32.mrb[17].mxu0 }
 0x11f   :  { %v424_v62 = vpop.f32.mrb[18].mxu0  ;;  %v493_v13 = vmul.f32 %v2483_v5, %v2483_v5 }
 0x120   :  { %v467_v1 = vsel %vm463_vm2, %v458_v50, %v459_v57  ;;  %v460_v2 = vrot.slane %v424_v62, 1  ;;  %v1773_v3 = vpop.f32.mrb[19].mxu0 }
 0x121   :  { %v471_v4 = vadd.f32 %v467_v1, %v452_v9 }
 0x122   :  { %v466_v7 = vsel %vm463_vm2, %v459_v57, %v460_v2 }
 0x123   :  { %v2493_v8 = vmul.f32 %v471_v4, %v2478_v63  ;;  %v472_v10 = vadd.f32 %v466_v7, %v453_v20  ;;  %v2509_v20 = vld [vmem:[%s2942_s8 + $0x18] sm:$0xff] }
 0x125   :  { %v494_v11 = vmul.f32 %v2493_v8, %v2493_v8  ;;  %v2498_v9 = vmul.f32 %v472_v10, %v2488_v6  ;;  %v429_v12 = vpop.f32.mrb[20].mxu0  ;;  %v482_v16 = vadd.f32 %v2493_v8, %v2483_v5  ;;  %v2126_v10 = vld [vmem:[%s2943_s4] sm:$0xff]  }
 0x126   :  { %v461_v14 = vrot.slane %v429_v12, 1  ;;  %v1776_v15 = vpop.f32.mrb[21].mxu0  ;;  %v2128_v12 = vld [vmem:[%s2943_s4 + $0x8] sm:$0xff]  }
 0x127   :  { %v432_v17 = vpop.f32.mrb[22].mxu0  ;;  %v499_v18 = vadd.f32 %v494_v11, %v493_v13  ;;  %v495_v19 = vmul.f32 %v2498_v9, %v2498_v9  ;;  %v483_v30 = vadd.f32 %v482_v16, %v2498_v9  ;;  %v2127_v11 = vld [vmem:[%s2943_s4 + $0x40] sm:$0xff]   ;;  %v2129_v13 = vld [vmem:[%s2943_s4 + $0x48] sm:$0xff]   ;;  %v2131_v15 = vld [vmem:[%s2943_s4 + $0x50] sm:$0xff]  }
 0x128   :  { %v465_v21 = vsel %vm463_vm2, %v460_v2, %v461_v14  ;;  %v462_v22 = vrot.slane %v432_v17, 1  ;;  %v1777_v24 = vpop.f32.mrb[23].mxu0  ;;  %v2132_v16 = vld [vmem:[%s2943_s4 + $0x18] sm:$0xff]  }
 0x129   :  { %v473_v25 = vadd.f32 %v465_v21, %v454_v23  ;;  %v500_v33 = vadd.f32 %v499_v18, %v495_v19  ;;  %v2133_v17 = vld [vmem:[%s2943_s4 + $0x58] sm:$0xff]   ;;  %v2134_v18 = vld [vmem:[%s2943_s4 + $0x20] sm:$0xff]   ;;  %v2136_v21 = vld [vmem:[%s2943_s4 + $0x28] sm:$0xff]  }
 0x12a   :  { %v464_v28 = vsel %vm463_vm2, %v461_v14, %v462_v22  ;;  %v469_v29 = vsel %vm463_vm2, %v462_v22, %v457_v48  ;;  %v2130_v14 = vld [vmem:[%s2943_s4 + $0x10] sm:$0xff]   ;;  %v2135_v19 = vld [vmem:[%s2943_s4 + $0x60] sm:$0xff]   ;;  %v2137_v22 = vld [vmem:[%s2943_s4 + $0x68] sm:$0xff]  }
 0x12b   :  { %v2529_v23 = vmul.f32 %v473_v25, %v2509_v20  ;;  %v474_v31 = vadd.f32 %v464_v28, %v455_v34  ;;  %v475_v32 = vadd.f32 %v469_v29, %v456_v42  ;;  %v2138_v24 = vld [vmem:[%s2943_s4 + $0x30] sm:$0xff]   ;;  %v2140_v28 = vld [vmem:[%s2943_s4 + $0x38] sm:$0xff]  }
 0x12c   :  { %v2139_v25 = vld [vmem:[%s2943_s4 + $0x70] sm:$0xff]   ;;  %v2141_v29 = vld [vmem:[%s2943_s4 + $0x78] sm:$0xff]  }
 0x12d   :  { %v484_v35 = vadd.f32 %v483_v30, %v2529_v23  ;;  %v496_v38 = vmul.f32 %v2529_v23, %v2529_v23  ;;  %v2535_v39 = vmul.f32 %v474_v31, %v2516_v26  ;;  %v2538_v41 = vmul.f32 %v475_v32, %v2521_v27 }
 0x12f   :  { %v501_v44 = vadd.f32 %v500_v33, %v496_v38  ;;  %v485_v45 = vadd.f32 %v484_v35, %v2535_v39  ;;  %v497_v47 = vmul.f32 %v2535_v39, %v2535_v39  ;;  %v498_v42 = vmul.f32 %v2538_v41, %v2538_v41 }
 0x131   :  { %v486_v34 = vadd.f32 %v485_v45, %v2538_v41  ;;  %v502_v48 = vadd.f32 %v501_v44, %v497_v47 }
 0x133   :  { %v487_v50 = vrot.slane %v486_v34, 4  ;;  %v503_v51 = vadd.f32 %v502_v48, %v498_v42  ;;  %v2618_v42 = vsub.s32 0, %v2452_v60  ;;  %v1353_v60 = vld [vmem:[%s2948_s9 + $0x18] sm:$0xff] }
 0x135   :  { %v488_v53 = vadd.f32 %v487_v50, %v486_v34  ;;  %v504_v54 = vrot.slane %v503_v51, 4  ;;  %v66_v34 = vld [vmem:[%s2944_s2] sm:$0x1] }
 0x137   :  { %v489_v55 = vrot.slane %v488_v53, 2  ;;  %v505_v57 = vadd.f32 %v504_v54, %v503_v51  ;;  %v67_v51 = vld [vmem:[%s2945_s3] sm:$0x1] }
 0x139   :  { %v490_v59 = vadd.f32 %v489_v55, %v488_v53  ;;  %v506_v62 = vrot.slane %v505_v57, 2 }
 0x13b   :  { %v491_v1 = vrot.slane %v490_v59, 1  ;;  %v507_v2 = vadd.f32 %v506_v62, %v505_v57 }
 0x13d   :  { %v492_v3 = vadd.f32 %v491_v1, %v490_v59  ;;  %v508_v4 = vrot.slane %v507_v2, 1 }
 0x13f   :  { %1811 = vmatmul.mubr.f32.vlgmr.msra.gmra.mrb[12].mxu1 %v492_v3  ;;  %v509_v7 = vadd.f32 %v508_v4, %v507_v2 }
 0x140   :  { %1864 = vmatprep.mubr.msk.bf16.mxu1 %vm2155_vm0, %v2154_v0  ;;  %1849 = vmatpush3.bf16.msra.mxu1 %v2126_v10 }
 0x141   :  { %1846 = vmatmul.mubr.f32.vlgmr.msra.gmra.mrb[24].mxu0 %v509_v7  ;;  %1850 = vmatprep.subr.bf16.mxu1 %v2154_v0 }
 0x142   :  { %1892 = vmatprep.mubr.msk.bf16.mxu0 %vm2155_vm0, %v2154_v0  ;;  %1877 = vmatpush3.bf16.msra.mxu0 %v2127_v11 }
 0x143   :  { %1878 = vmatprep.subr.bf16.mxu0 %v2154_v0 }
 0x144   :  { %1851 = vmatpush3.bf16.msra.mxu1 %v2128_v12 }
 0x145   :  { %1852 = vmatprep.subr.bf16.mxu1 %v2154_v0 }
 0x146   :  { %1879 = vmatpush3.bf16.msra.mxu0 %v2129_v13 }
 0x147   :  { %1880 = vmatprep.subr.bf16.mxu0 %v2154_v0 }
 0x148   :  { %1853 = vmatpush3.bf16.msra.mxu1 %v2130_v14 }
 0x149   :  { %1854 = vmatprep.subr.bf16.mxu1 %v2154_v0 }
 0x14a   :  { %1881 = vmatpush3.bf16.msra.mxu0 %v2131_v15 }
 0x14b   :  { %1882 = vmatprep.subr.bf16.mxu0 %v2154_v0 }
 0x14c   :  { %1855 = vmatpush3.bf16.msra.mxu1 %v2132_v16 }
 0x14d   :  { %1856 = vmatprep.subr.bf16.mxu1 %v2154_v0 }
 0x14e   :  { %1883 = vmatpush3.bf16.msra.mxu0 %v2133_v17 }
 0x14f   :  { %1884 = vmatprep.subr.bf16.mxu0 %v2154_v0 }
 0x150   :  { %1857 = vmatpush3.bf16.msra.mxu1 %v2134_v18 }
 0x151   :  { %1858 = vmatprep.subr.bf16.mxu1 %v2154_v0 }
 0x152   :  { %1885 = vmatpush3.bf16.msra.mxu0 %v2135_v19  ;;  %v2142_v19 = vld [vmem:[%s2943_s4 + $0x80] sm:$0xff]  }
 0x153   :  { %1886 = vmatprep.subr.bf16.mxu0 %v2154_v0 }
 0x154   :  { %1859 = vmatpush3.bf16.msra.mxu1 %v2136_v21 }
 0x155   :  { %1860 = vmatprep.subr.bf16.mxu1 %v2154_v0 }
 0x156   :  { %1887 = vmatpush3.bf16.msra.mxu0 %v2137_v22 }
 0x157   :  { %1888 = vmatprep.subr.bf16.mxu0 %v2154_v0 }
 0x158   :  { %1861 = vmatpush3.bf16.msra.mxu1 %v2138_v24 }
 0x159   :  { %1862 = vmatprep.subr.bf16.mxu1 %v2154_v0 }
 0x15a   :  { %1889 = vmatpush3.bf16.msra.mxu0 %v2139_v25 }
 0x15b   :  { %1890 = vmatprep.subr.bf16.mxu0 %v2154_v0 }
 0x15c   :  { %1863 = vmatpush3.bf16.msra.mxu1 %v2140_v28 }
 0x15d   :  { %1904 = vmatprep.subr.bf16.mxu1 %v2154_v0 }
 0x15e   :  { %1891 = vmatpush3.bf16.msra.mxu0 %v2141_v29  ;;  %v2143_v29 = vld [vmem:[%s2943_s4 + $0x88] sm:$0xff]  }
 0x15f   :  { %2050 = vmatprep.subr.bf16.mxu0 %v2156_v37 }
 0x212   :  { %v576_v30 = vpop.f32.mrb[12].mxu1 }
 0x213   :  { %v650_v31 = vmul.f32 0.001953125, %v576_v30  ;;  %v1812_v32 = vpop.f32.mrb[13].mxu1  ;;  %v2144_v30 = vld [vmem:[%s2943_s4 + $0x90] sm:$0xff]  }
 0x214   :  { %v646_v33 = vpop.f32.mrb[24].mxu0  ;;  %v2146_v32 = vld [vmem:[%s2943_s4 + $0xa0] sm:$0xff]  }
 0x215   :  { %v652_v35 = vmul.f32 %v650_v31, %v650_v31  ;;  %v651_v38 = vmul.f32 0.001953125, %v646_v33  ;;  %v1847_v44 = vpop.f32.mrb[25].mxu0  ;;  %v2147_v33 = vld [vmem:[%s2943_s4 + $0xa8] sm:$0xff]  }
 0x217   :  { %v653_v45 = vsub.f32 %v651_v38, %v652_v35  ;;  %v2148_v35 = vld [vmem:[%s2943_s4 + $0xb0] sm:$0xff]   ;;  %v2149_v38 = vld [vmem:[%s2943_s4 + $0xb8] sm:$0xff]  }
 0x219   :  { %v654_v47 = vadd.f32 1e-05, %v653_v45 }
 0x21b   :  { %2150 = vrsqrt.f32 %v654_v47 }
 0x225   :  { %v2151_v48 = vpop.eup %2150 }
 0x226   :  { %v656_v50 = vmul.f32 %v2151_v48, %v66_v34 }
 0x228   :  { %v657_v53 = vmul.f32 %v656_v50, %v650_v31  ;;  %v663_v54 = vrot.slane %v656_v50, %v2618_v42  ;;  %v2145_v31 = vld [vmem:[%s2943_s4 + $0x98] sm:$0xff]  }
 0x22a   :  { %v658_v55 = vsub.f32 %v67_v51, %v657_v53  ;;  %v665_v57 = vmul.f32 %v663_v54, %v2483_v5  ;;  %v666_v62 = vmul.f32 %v663_v54, %v2493_v8  ;;  %v667_v1 = vmul.f32 %v663_v54, %v2498_v9 }
 0x22b   :  { %v668_v2 = vmul.f32 %v663_v54, %v2529_v23  ;;  %v669_v3 = vmul.f32 %v663_v54, %v2535_v39  ;;  %v670_v4 = vmul.f32 %v663_v54, %v2538_v41 }
 0x22c   :  { %v675_v59 = vrot.slane %v658_v55, %v2618_v42 }
 0x22e   :  { %v677_v7 = vadd.f32 %v675_v59, %v665_v57  ;;  %v678_v10 = vadd.f32 %v675_v59, %v666_v62  ;;  %v679_v11 = vadd.f32 %v675_v59, %v667_v1  ;;  %v680_v12 = vadd.f32 %v675_v59, %v668_v2 }
 0x22f   :  { %v681_v13 = vadd.f32 %v675_v59, %v669_v3  ;;  %v682_v14 = vadd.f32 %v675_v59, %v670_v4 }
 0x230   :  { %v683_v15 = vmax.f32 %v677_v7, 0.0  ;;  %v684_v5 = vmax.f32 %v678_v10, 0.0  ;;  %v685_v16 = vmax.f32 %v679_v11, 0.0  ;;  %v686_v17 = vmax.f32 %v680_v12, 0.0 }
 0x231   :  { %v687_v18 = vmax.f32 %v681_v13, 0.0  ;;  %v688_v8 = vmax.f32 %v682_v14, 0.0 }
 0x232   :  { %v689_v9 = vmul.f32 %v683_v15, %v2473_v61  ;;  %v690_v23 = vmul.f32 %v684_v5, %v2478_v63  ;;  %v691_v39 = vmul.f32 %v685_v16, %v2488_v6  ;;  %v692_v41 = vmul.f32 %v686_v17, %v2509_v20 }
 0x233   :  { %v693_v21 = vmul.f32 %v687_v18, %v2516_v26  ;;  %v694_v22 = vmul.f32 %v688_v8, %v2521_v27 }
 0x234   :  { %v697_v24 = vpack.c.bf16 %v690_v23, %v689_v9  ;;  %v698_v25 = vpack.c.bf16 %v692_v41, %v691_v39 }
 0x235   :  { %v699_v28 = vpack.c.bf16 %v694_v22, %v693_v21 }
 0x236   :  { %1865 = vmatmul.mubr.bf16.vlgmr.msra.gmra.mrb[16].mxu1 %v697_v24  ;;  %1893 = vmatmul.mubr.bf16.vlgmr.msra.gmra.mrb[28].mxu0 %v697_v24 }
 0x237   :  { %1905 = vmatpush3.bf16.msra.mxu1 %v2142_v19  ;;  %1868 = vmatprep.mubr.msk.bf16.mxu1 %vm2155_vm0, %v2154_v0 }
 0x238   :  { %1906 = vmatprep.subr.bf16.mxu1 %v2154_v0  ;;  %1896 = vmatprep.mubr.msk.bf16.mxu0 %vm2155_vm0, %v2154_v0 }
 0x239   :  { %2052 = vmatpush3.bf16.msra.mxu0 %v2360_v36 }
 0x23a   :  { %2053 = vmatprep.subr.bf16.mxu0 %v2156_v37 }
 0x23b   :  { %1907 = vmatpush3.bf16.msra.mxu1 %v2143_v29 }
 0x23c   :  { %1908 = vmatprep.subr.bf16.mxu1 %v2154_v0 }
 0x23d   :  { %2055 = vmatpush3.bf16.msra.mxu0 %v2374_v40 }
 0x23e   :  { %1869 = vmatmul.mubr.bf16.gmra.mrb[20].mxu1 %v698_v25  ;;  %1897 = vmatmul.mubr.bf16.gmra.mrb[32].mxu0 %v698_v25 }
 0x23f   :  { %1909 = vmatpush3.bf16.msra.mxu1 %v2144_v30  ;;  %1872 = vmatprep.mubr.msk.bf16.mxu1 %vm2155_vm0, %v2154_v0 }
 0x240   :  { %1910 = vmatprep.subr.bf16.mxu1 %v2154_v0  ;;  %1900 = vmatprep.mubr.msk.bf16.mxu0 %vm2155_vm0, %v2154_v0 }
 0x241   :  { %2056 = vmatprep.subr.bf16.mxu0 %v2156_v37 }
 0x242   :  { %2058 = vmatpush3.bf16.msra.mxu0 %v2386_v43 }
 0x243   :  { %1911 = vmatpush3.bf16.msra.mxu1 %v2145_v31  ;;  %2059 = vmatprep.subr.bf16.mxu0 %v2156_v37 }
 0x244   :  { %1912 = vmatprep.subr.bf16.mxu1 %v2154_v0 }
 0x246   :  { %1873 = vmatmul.mubr.bf16.gmra.mrb[24].mxu1 %v699_v28  ;;  %1901 = vmatmul.mubr.bf16.gmra.mrb[36].mxu0 %v699_v28 }
 0x247   :  { %1913 = vmatpush3.bf16.msra.mxu1 %v2146_v32  ;;  %1920 = vmatprep.mubr.msk.bf16.mxu1 %vm2155_vm0, %v2154_v0 }
 0x248   :  { %1914 = vmatprep.subr.bf16.mxu1 %v2154_v0  ;;  %2061 = vmatpush3.bf16.msra.mxu0 %v2398_v46 }
 0x249   :  { %2062 = vmatprep.subr.bf16.mxu0 %v2156_v37  ;;  %1964 = vmatprep.mubr.msk.f32.mxu0 %vm2155_vm0, %v2154_v0 }
 0x24b   :  { %1915 = vmatpush3.bf16.msra.mxu1 %v2147_v33 }
 0x24c   :  { %1916 = vmatprep.subr.bf16.mxu1 %v2154_v0  ;;  %2064 = vmatpush3.bf16.msra.mxu0 %v2410_v49 }
 0x24d   :  { %2065 = vmatprep.subr.bf16.mxu0 %v2156_v37 }
 0x24f   :  { %1917 = vmatpush3.bf16.msra.mxu1 %v2148_v35 }
 0x250   :  { %1918 = vmatprep.subr.bf16.mxu1 %v2154_v0  ;;  %2067 = vmatpush3.bf16.msra.mxu0 %v2422_v52 }
 0x251   :  { %2068 = vmatprep.subr.bf16.mxu0 %v2156_v37 }
 0x253   :  { %1919 = vmatpush3.bf16.msra.mxu1 %v2149_v38 }
 0x254   :  { %2074 = vmatprep.subr.bf16.mxu1 %v2156_v37  ;;  %2070 = vmatpush3.bf16.msra.mxu0 %v2437_v56 }
 0x255   :  { %2071 = vmatprep.subr.bf16.mxu0 %v2156_v37 }
 0x256   :  { %1921 = vmatmul.mubr.bf16.vlgmr.msra.gmra.mrb[28].mxu1 %v697_v24 }
 0x257   :  { %1924 = vmatprep.mubr.msk.bf16.mxu1 %vm2155_vm0, %v2154_v0  ;;  %2076 = vmatpush3.bf16.msra.mxu1 %v2360_v36 }
 0x258   :  { %2077 = vmatprep.subr.bf16.mxu1 %v2156_v37  ;;  %2073 = vmatpush3.bf16.msra.mxu0 %v2444_v58 }
 0x25b   :  { %2079 = vmatpush3.bf16.msra.mxu1 %v2374_v40 }
 0x25c   :  { %2080 = vmatprep.subr.bf16.mxu1 %v2156_v37 }
 0x25e   :  { %1925 = vmatmul.mubr.bf16.gmra.mrb[32].mxu1 %v698_v25 }
 0x25f   :  { %1928 = vmatprep.mubr.msk.bf16.mxu1 %vm2155_vm0, %v2154_v0  ;;  %2082 = vmatpush3.bf16.msra.mxu1 %v2386_v43 }
 0x260   :  { %2083 = vmatprep.subr.bf16.mxu1 %v2156_v37 }
 0x263   :  { %2085 = vmatpush3.bf16.msra.mxu1 %v2398_v46 }
 0x264   :  { %2086 = vmatprep.subr.bf16.mxu1 %v2156_v37 }
 0x266   :  { %1929 = vmatmul.mubr.bf16.gmra.mrb[36].mxu1 %v699_v28 }
 0x267   :  { %2088 = vmatpush3.bf16.msra.mxu1 %v2410_v49  ;;  %1999 = vmatprep.mubr.msk.f32.mxu1 %vm2155_vm0, %v2154_v0 }
 0x268   :  { %2089 = vmatprep.subr.bf16.mxu1 %v2156_v37 }
 0x26b   :  { %2091 = vmatpush3.bf16.msra.mxu1 %v2422_v52 }
 0x26c   :  { %2092 = vmatprep.subr.bf16.mxu1 %v2156_v37 }
 0x26f   :  { %2094 = vmatpush3.bf16.msra.mxu1 %v2437_v56 }
 0x270   :  { %2095 = vmatprep.subr.bf16.mxu1 %v2156_v37 }
 0x273   :  { %2097 = vmatpush3.bf16.msra.mxu1 %v2444_v58 }
 0x309   :  { %v798_v36 = vpop.f32.mrb[16].mxu1  ;;  %v920_v40 = vpop.f32.mrb[28].mxu0 }
 0x30a   :  { %v1866_v43 = vpop.f32.mrb[17].mxu1  ;;  %v1894_v46 = vpop.f32.mrb[29].mxu0  ;;  %v1065_v45 = vrot.slane %v798_v36, 7 }
 0x30b   :  { %v801_v49 = vpop.f32.mrb[18].mxu1  ;;  %v923_v44 = vpop.f32.mrb[30].mxu0 }
 0x30c   :  { %v1066_v0 = vrot.slane %v801_v49, 7  ;;  %v1867_v47 = vpop.f32.mrb[19].mxu1  ;;  %v1895_v34 = vpop.f32.mrb[31].mxu0 }
 0x30e   :  { %v1075_v52 = vsel %vm444_vm1, %v1065_v45, %v1066_v0 }
 0x30f   :  { %v1078_v48 = vadd.f32 %v1075_v52, %v923_v44 }
 0x311   :  { %v806_v50 = vpop.f32.mrb[20].mxu1  ;;  %v928_v56 = vpop.f32.mrb[32].mxu0 }
 0x312   :  { %v1067_v51 = vrot.slane %v806_v50, 7  ;;  %v1870_v37 = vpop.f32.mrb[21].mxu1  ;;  %v1898_v53 = vpop.f32.mrb[33].mxu0 }
 0x313   :  { %v809_v58 = vpop.f32.mrb[22].mxu1  ;;  %v931_v54 = vpop.f32.mrb[34].mxu0 }
 0x314   :  { %v1074_v55 = vsel %vm444_vm1, %v1066_v0, %v1067_v51  ;;  %v1068_v57 = vrot.slane %v809_v58, 7  ;;  %v1871_v59 = vpop.f32.mrb[23].mxu1  ;;  %v1899_v62 = vpop.f32.mrb[35].mxu0 }
 0x315   :  { %v1079_v1 = vadd.f32 %v1074_v55, %v928_v56 }
 0x316   :  { %v1073_v2 = vsel %vm444_vm1, %v1067_v51, %v1068_v57 }
 0x317   :  { %v1080_v3 = vadd.f32 %v1073_v2, %v931_v54 }
 0x319   :  { %v814_v4 = vpop.f32.mrb[24].mxu1  ;;  %v936_v7 = vpop.f32.mrb[36].mxu0 }
 0x31a   :  { %v1069_v10 = vrot.slane %v814_v4, 7  ;;  %v1874_v11 = vpop.f32.mrb[25].mxu1  ;;  %v1902_v12 = vpop.f32.mrb[37].mxu0 }
 0x31b   :  { %v817_v13 = vpop.f32.mrb[26].mxu1  ;;  %v939_v14 = vpop.f32.mrb[38].mxu0 }
 0x31c   :  { %v1072_v15 = vsel %vm444_vm1, %v1068_v57, %v1069_v10  ;;  %v1070_v5 = vrot.slane %v817_v13, 7  ;;  %v1875_v16 = vpop.f32.mrb[27].mxu1  ;;  %v1903_v17 = vpop.f32.mrb[39].mxu0 }
 0x31d   :  { %v1081_v18 = vadd.f32 %v1072_v15, %v936_v7 }
 0x31e   :  { %v1076_v8 = vsel %vm444_vm1, %v1070_v5, %v1065_v45  ;;  %v1071_v9 = vsel %vm444_vm1, %v1069_v10, %v1070_v5 }
 0x31f   :  { %v1077_v23 = vadd.f32 %v1076_v8, %v920_v40  ;;  %v1082_v39 = vadd.f32 %v1071_v9, %v939_v14 }
 0x329   :  { %v1042_v41 = vpop.f32.mrb[28].mxu1 }
 0x32a   :  { %v1922_v19 = vpop.f32.mrb[29].mxu1  ;;  %v1083_v22 = vrot.slane %v1042_v41, 1 }
 0x32b   :  { %v1045_v21 = vpop.f32.mrb[30].mxu1 }
 0x32c   :  { %v1084_v24 = vrot.slane %v1045_v21, 1  ;;  %v1923_v25 = vpop.f32.mrb[31].mxu1 }
 0x32e   :  { %v1093_v28 = vsel %vm463_vm2, %v1083_v22, %v1084_v24 }
 0x32f   :  { %v1095_v29 = vadd.f32 %v1093_v28, %v1077_v23 }
 0x331   :  { %v1050_v30 = vpop.f32.mrb[32].mxu1  ;;  %v2734_v43 = vmul.f32 %v1095_v29, %v2473_v61 }
 0x332   :  { %v1085_v31 = vrot.slane %v1050_v30, 1  ;;  %v1926_v32 = vpop.f32.mrb[33].mxu1 }
 0x333   :  { %v1053_v33 = vpop.f32.mrb[34].mxu1  ;;  %v1118_v34 = vmul.f32 %v2734_v43, %v2734_v43 }
 0x334   :  { %v1092_v35 = vsel %vm463_vm2, %v1084_v24, %v1085_v31  ;;  %v1086_v38 = vrot.slane %v1053_v33, 1  ;;  %v1927_v36 = vpop.f32.mrb[35].mxu1  ;;  %v695_v33 = vld [vmem:[%s2946_s5] sm:$0x1]  ;;  %s2157_s5 = smov 120  }
 0x335   :  { %v1096_v40 = vadd.f32 %v1092_v35, %v1078_v48  ;;  %v696_v36 = vld [vmem:[%s2947_s6] sm:$0x1] }
 0x336   :  { %v1091_v46 = vsel %vm463_vm2, %v1085_v31, %v1086_v38 }
 0x337   :  { %v2739_v49 = vmul.f32 %v1096_v40, %v2478_v63  ;;  %v1097_v44 = vadd.f32 %v1091_v46, %v1079_v1 }
 0x339   :  { %v1119_v45 = vmul.f32 %v2739_v49, %v2739_v49  ;;  %v2744_v0 = vmul.f32 %v1097_v44, %v2488_v6  ;;  %v1058_v47 = vpop.f32.mrb[36].mxu1  ;;  %v1107_v48 = vadd.f32 %v2739_v49, %v2734_v43 }
 0x33a   :  { %v1087_v52 = vrot.slane %v1058_v47, 1  ;;  %v1930_v61 = vpop.f32.mrb[37].mxu1 }
 0x33b   :  { %v1061_v50 = vpop.f32.mrb[38].mxu1  ;;  %v1124_v56 = vadd.f32 %v1119_v45, %v1118_v34  ;;  %v1120_v63 = vmul.f32 %v2744_v0, %v2744_v0  ;;  %v1108_v55 = vadd.f32 %v1107_v48, %v2744_v0 }
 0x33c   :  { %v1090_v51 = vsel %vm463_vm2, %v1086_v38, %v1087_v52  ;;  %v1088_v37 = vrot.slane %v1061_v50, 1  ;;  %v1931_v6 = vpop.f32.mrb[39].mxu1 }
 0x33d   :  { %v1098_v53 = vadd.f32 %v1090_v51, %v1080_v3  ;;  %v1125_v1 = vadd.f32 %v1124_v56, %v1120_v63 }
 0x33e   :  { %v1089_v58 = vsel %vm463_vm2, %v1087_v52, %v1088_v37  ;;  %v1094_v54 = vsel %vm463_vm2, %v1088_v37, %v1083_v22 }
 0x33f   :  { %v1104_v57 = vmul.f32 %v1098_v53, %v2509_v20  ;;  %v1099_v59 = vadd.f32 %v1089_v58, %v1081_v18  ;;  %v1100_v62 = vadd.f32 %v1094_v54, %v1082_v39 }
 0x341   :  { %v1109_v2 = vadd.f32 %v1108_v55, %v1104_v57  ;;  %v1121_v4 = vmul.f32 %v1104_v57, %v1104_v57  ;;  %v1105_v7 = vmul.f32 %v1099_v59, %v2516_v26  ;;  %v1106_v10 = vmul.f32 %v1100_v62, %v2521_v27 }
 0x343   :  { %v1126_v3 = vadd.f32 %v1125_v1, %v1121_v4  ;;  %v1110_v11 = vadd.f32 %v1109_v2, %v1105_v7  ;;  %v1122_v12 = vmul.f32 %v1105_v7, %v1105_v7  ;;  %v1123_v14 = vmul.f32 %v1106_v10, %v1106_v10 }
 0x345   :  { %v1111_v13 = vadd.f32 %v1110_v11, %v1106_v10  ;;  %v1127_v15 = vadd.f32 %v1126_v3, %v1122_v12 }
 0x347   :  { %v1112_v5 = vrot.slane %v1111_v13, 4  ;;  %v1128_v16 = vadd.f32 %v1127_v15, %v1123_v14 }
 0x349   :  { %v1113_v17 = vadd.f32 %v1112_v5, %v1111_v13  ;;  %v1129_v8 = vrot.slane %v1128_v16, 4  ;;  %v1352_v13 = vld [vmem:[%s2948_s9 + $0x10] sm:$0xff]  ;;  %v1350_v5 = vld [vmem:[%s2948_s9] sm:$0xff] }
 0x34b   :  { %v1114_v20 = vrot.slane %v1113_v17, 2  ;;  %v1130_v18 = vadd.f32 %v1129_v8, %v1128_v16  ;;  %v1351_v16 = vld [vmem:[%s2948_s9 + $0x8] sm:$0xff]  ;;  %v1388_v8 = vadd.s32 16, %v1352_v13 }
 0x34d   :  { %v1115_v9 = vadd.f32 %v1114_v20, %v1113_v17  ;;  %v1131_v23 = vrot.slane %v1130_v18, 2  ;;  %v1364_v17 = vadd.s32 1, %v1352_v13  ;;  %v1362_v20 = vadd.s32 1, %v1350_v5 }
 0x34f   :  { %v1116_v39 = vrot.slane %v1115_v9, 1  ;;  %v1132_v41 = vadd.f32 %v1131_v23, %v1130_v18  ;;  %v1386_v18 = vadd.s32 16, %v1350_v5 }
 0x351   :  { %v1117_v19 = vadd.f32 %v1116_v39, %v1115_v9  ;;  %v1133_v26 = vrot.slane %v1132_v41, 1  ;;  %v1365_v9 = vadd.s32 1, %v1353_v60 }
 0x353   :  { %1965 = vmatmul.mubr.f32.vlgmr.msra.gmra.mrb[26].mxu0 %v1117_v19  ;;  %v1134_v27 = vadd.f32 %v1133_v26, %v1132_v41  ;;  %v1355_v41 = vld [vmem:[%s2948_s9 + $0x28] sm:$0xff]  ;;  %v1354_v19 = vld [vmem:[%s2948_s9 + $0x20] sm:$0xff] }
 0x355   :  { %2000 = vmatmul.mubr.f32.vlgmr.msra.gmra.mrb[14].mxu1 %v1134_v27  ;;  %v1363_v27 = vadd.s32 1, %v1351_v16 }
 0x426   :  { %v1201_v21 = vpop.f32.mrb[26].mxu0 }
 0x427   :  { %v1275_v22 = vmul.f32 0.001953125, %v1201_v21  ;;  %v1966_v24 = vpop.f32.mrb[27].mxu0  ;;  %v1389_v21 = vadd.s32 16, %v1353_v60 }
 0x428   :  { %v1271_v25 = vpop.f32.mrb[14].mxu1 }
 0x429   :  { %v1277_v28 = vmul.f32 %v1275_v22, %v1275_v22  ;;  %v1276_v29 = vmul.f32 0.001953125, %v1271_v25  ;;  %v2001_v30 = vpop.f32.mrb[15].mxu1  ;;  %v1367_v25 = vadd.s32 1, %v1355_v41 }
 0x42a   :  { %v2845_v30 = vadd.s32 16, %v1355_v41 }
 0x42b   :  { %v1278_v31 = vsub.f32 %v1276_v29, %v1277_v28  ;;  %v1366_v28 = vadd.s32 1, %v1354_v19  ;;  %v1411_v29 = vadd.s32 17, %v1351_v16 }
 0x42d   :  { %v1279_v32 = vadd.f32 1e-05, %v1278_v31 }
 0x42f   :  { %2152 = vrsqrt.f32 %v1279_v32 }
 0x439   :  { %v2153_v35 = vpop.eup %2152 }
 0x43a   :  { %v1281_v38 = vmul.f32 %v2153_v35, %v695_v33 }
 0x43c   :  { %v1282_v40 = vmul.f32 %v1281_v38, %v1275_v22  ;;  %v1288_v46 = vrot.slane %v1281_v38, %v2618_v42  ;;  %v1387_v22 = vadd.s32 16, %v1351_v16  ;;  %v1410_v38 = vadd.s32 17, %v1350_v5 }
 0x43e   :  { %v1283_v44 = vsub.f32 %v696_v36, %v1282_v40  ;;  %v1292_v45 = vmul.f32 %v1288_v46, %v2744_v0  ;;  %v1290_v34 = vmul.f32 %v1288_v46, %v2734_v43  ;;  %v1293_v52 = vmul.f32 %v1288_v46, %v1104_v57 }
 0x43f   :  { %v1291_v61 = vmul.f32 %v1288_v46, %v2739_v49  ;;  %v1295_v48 = vmul.f32 %v1288_v46, %v1106_v10  ;;  %v1294_v50 = vmul.f32 %v1288_v46, %v1105_v7  ;;  %v1390_v46 = vadd.s32 16, %v1354_v19 }
 0x440   :  { %v1300_v47 = vrot.slane %v1283_v44, %v2618_v42  ;;  %v1413_v44 = vadd.s32 17, %v1353_v60 }
 0x442   :  { %v1304_v56 = vadd.f32 %v1300_v47, %v1292_v45  ;;  %v1302_v63 = vadd.f32 %v1300_v47, %v1290_v34  ;;  %v1305_v51 = vadd.f32 %v1300_v47, %v1293_v52  ;;  %v1303_v37 = vadd.f32 %v1300_v47, %v1291_v61 }
 0x443   :  { %v1307_v6 = vadd.f32 %v1300_v47, %v1295_v48  ;;  %v1306_v53 = vadd.f32 %v1300_v47, %v1294_v50  ;;  %v1412_v45 = vadd.s32 17, %v1352_v13 }
 0x444   :  { %v2773_v58 = vmax.f32 %v1304_v56, 0.0  ;;  %v1308_v54 = vmax.f32 %v1302_v63, 0.0  ;;  %v2776_v42 = vmax.f32 %v1305_v51, 0.0  ;;  %v2778_v43 = vmax.f32 %v1303_v37, 0.0 }
 0x445   :  { %v2782_v49 = vmax.f32 %v1307_v6, 0.0  ;;  %v2784_v0 = vmax.f32 %v1306_v53, 0.0 }
 0x446   :  { %1330 = vrot.lane.b32.xlu1 %v2773_v58, %s2157_s5  ;;  %1326 = vrot.lane.b32.xlu0 %v1308_v54, %s2157_s5  ;;  %v1315_v55 = vrot.slane %v2778_v43, 1  ;;  %v1316_v57 = vrot.slane %v2773_v58, 1  ;;  %v1314_v59 = vrot.slane %v1308_v54, 1  ;;  %v1317_v2 = vrot.slane %v2776_v42, 1 }
 0x447   :  { %v1318_v4 = vrot.slane %v2784_v0, 1  ;;  %v1319_v3 = vrot.slane %v2782_v49, 1 }
 0x448   :  { %v2792_v62 = vsel %vm463_vm2, %v1315_v55, %v1316_v57  ;;  %v1324_v1 = vsel %vm463_vm2, %v1314_v59, %v1315_v55  ;;  %v2805_v10 = vsel %vm463_vm2, %v1316_v57, %v1317_v2  ;;  %v1415_v55 = vadd.s32 17, %v1355_v41 }
 0x449   :  { %v2801_v7 = vsel %vm463_vm2, %v1317_v2, %v1318_v4  ;;  %v2812_v11 = vsel %vm463_vm2, %v1319_v3, %v1314_v59  ;;  %v2816_v12 = vsel %vm463_vm2, %v1318_v4, %v1319_v3  ;;  %v1414_v57 = vadd.s32 17, %v1354_v19 }
 0x44a   :  { %1332 = vrot.lane.b32.xlu1 %v2776_v42, %s2157_s5  ;;  %1328 = vrot.lane.b32.xlu0 %v2778_v43, %s2157_s5 }
 0x44e   :  { %1336 = vrot.lane.b32.xlu1 %v2782_v49, %s2157_s5  ;;  %1334 = vrot.lane.b32.xlu0 %v2784_v0, %s2157_s5 }
 0x452   :  { %1340 = vrot.lane.b32.xlu1 %v2792_v62, %s2157_s5  ;;  %1338 = vrot.lane.b32.xlu0 %v1324_v1, %s2157_s5 }
 0x456   :  { %1344 = vrot.lane.b32.xlu1 %v2801_v7, %s2157_s5  ;;  %1342 = vrot.lane.b32.xlu0 %v2805_v10, %s2157_s5 }
 0x45a   :  { %1348 = vrot.lane.b32.xlu1 %v2812_v11, %s2157_s5  ;;  %1346 = vrot.lane.b32.xlu0 %v2816_v12, %s2157_s5 }
 0x4b8   :  { %v1331_v14 = vpop.permute.xlu1 %1330  ;;  %v1327_v15 = vpop.permute.xlu0 %1326 }
 0x4b9   :  { %vm1356_vm3 = vcmp.gt.f32.partialorder %v1327_v15, %v1308_v54  ;;  %vm1358_vm4 = vcmp.gt.f32.partialorder %v1331_v14, %v2773_v58 }
 0x4ba   :  { %v1374_v26 = vsel %vm1356_vm3, %v1327_v15, %v1308_v54  ;;  %v1376_v31 = vsel %vm1358_vm4, %v1331_v14, %v2773_v58  ;;  %v1368_v32 = vsel %vm1356_vm3, %v1362_v20, %v1350_v5  ;;  %v1370_v47 = vsel %vm1358_vm4, %v1364_v17, %v1352_v13 }
 0x4bb   :  { %vm1380_vm7 = vcmp.gt.f32.partialorder %v1324_v1, %v1374_v26  ;;  %vm1382_vm11 = vcmp.gt.f32.partialorder %v2805_v10, %v1376_v31 }
 0x4bc   :  { %v1333_v23 = vpop.permute.xlu1 %1332  ;;  %v1329_v39 = vpop.permute.xlu0 %1328  ;;  %v1392_v34 = vsel %vm1380_vm7, %v1386_v18, %v1368_v32  ;;  %v1398_v52 = vsel %vm1380_vm7, %v1324_v1, %v1374_v26 }
 0x4bd   :  { %vm1357_vm5 = vcmp.gt.f32.partialorder %v1329_v39, %v2778_v43  ;;  %vm1359_vm6 = vcmp.gt.f32.partialorder %v1333_v23, %v2776_v42 }
 0x4be   :  { %v1375_v24 = vsel %vm1357_vm5, %v1329_v39, %v2778_v43  ;;  %v1377_v36 = vsel %vm1359_vm6, %v1333_v23, %v2776_v42  ;;  %v1369_v40 = vsel %vm1357_vm5, %v1363_v27, %v1351_v16  ;;  %v1371_v61 = vsel %vm1359_vm6, %v1365_v9, %v1353_v60 }
 0x4bf   :  { %vm1381_vm8 = vcmp.gt.f32.partialorder %v2792_v62, %v1375_v24  ;;  %vm1383_vm12 = vcmp.gt.f32.partialorder %v2801_v7, %v1377_v36  ;;  %v1394_v42 = vsel %vm1382_vm11, %v1388_v8, %v1370_v47  ;;  %v1400_v43 = vsel %vm1382_vm11, %v2805_v10, %v1376_v31 }
 0x4c0   :  { %v1337_v33 = vpop.permute.xlu1 %1336  ;;  %v1335_v35 = vpop.permute.xlu0 %1334  ;;  %v1393_v48 = vsel %vm1381_vm8, %v1387_v22, %v1369_v40  ;;  %v1399_v56 = vsel %vm1381_vm8, %v2792_v62, %v1375_v24  ;;  %v1395_v59 = vsel %vm1383_vm12, %v1389_v21, %v1371_v61  ;;  %v1401_v2 = vsel %vm1383_vm12, %v2801_v7, %v1377_v36 }
 0x4c1   :  { %vm1361_vm9 = vcmp.gt.f32.partialorder %v1337_v33, %v2782_v49  ;;  %vm1360_vm10 = vcmp.gt.f32.partialorder %v1335_v35, %v2784_v0 }
 0x4c2   :  { %v1379_v51 = vsel %vm1361_vm9, %v1337_v33, %v2782_v49  ;;  %v1378_v37 = vsel %vm1360_vm10, %v1335_v35, %v2784_v0  ;;  %v1373_v62 = vsel %vm1361_vm9, %v1367_v25, %v1355_v41  ;;  %v1372_v1 = vsel %vm1360_vm10, %v1366_v28, %v1354_v19 }
 0x4c3   :  { %vm1385_vm15 = vcmp.gt.f32.partialorder %v2812_v11, %v1379_v51  ;;  %vm1384_vm0 = vcmp.gt.f32.partialorder %v2816_v12, %v1378_v37 }
 0x4c4   :  { %v1341_v50 = vpop.permute.xlu1 %1340  ;;  %v1339_v63 = vpop.permute.xlu0 %1338  ;;  %v1403_v7 = vsel %vm1385_vm15, %v2812_v11, %v1379_v51  ;;  %v1402_v15 = vsel %vm1384_vm0, %v2816_v12, %v1378_v37  ;;  %v1397_v60 = vsel %vm1385_vm15, %v2845_v30, %v1373_v62  ;;  %v1396_v16 = vsel %vm1384_vm0, %v1390_v46, %v1372_v1 }
 0x4c5   :  { %vm1405_vm13 = vcmp.gt.f32.partialorder %v1341_v50, %v1399_v56  ;;  %vm1404_vm14 = vcmp.gt.f32.partialorder %v1339_v63, %v1398_v52 }
 0x4c6   :  { %v1417_v6 = vsel %vm1405_vm13, %v1411_v29, %v1393_v48  ;;  %v1423_v53 = vsel %vm1405_vm13, %v1341_v50, %v1399_v56  ;;  %v1416_v58 = vsel %vm1404_vm14, %v1410_v38, %v1392_v34  ;;  %v1422_v54 = vsel %vm1404_vm14, %v1339_v63, %v1398_v52 }
 0x4c7   :  { %1429 = vst [vmem:[%s2949_s10 + $0x8] sm:$0xff] %v1423_v53  ;;  %1435 = vst [vmem:[%s2950_s11 + $0x8] sm:$0xff] %v1417_v6 }
 0x4c8   :  { %1428 = vst [vmem:[%s2949_s10] sm:$0xff] %v1422_v54  ;;  %1434 = vst [vmem:[%s2950_s11] sm:$0xff] %v1416_v58  ;;  %v1345_v4 = vpop.permute.xlu1 %1344  ;;  %v1343_v3 = vpop.permute.xlu0 %1342 }
 0x4c9   :  { %vm1407_vm1 = vcmp.gt.f32.partialorder %v1345_v4, %v1401_v2  ;;  %vm1406_vm2 = vcmp.gt.f32.partialorder %v1343_v3, %v1400_v43 }
 0x4ca   :  { %v1419_v10 = vsel %vm1407_vm1, %v1413_v44, %v1395_v59  ;;  %v1425_v13 = vsel %vm1407_vm1, %v1345_v4, %v1401_v2  ;;  %v1418_v14 = vsel %vm1406_vm2, %v1412_v45, %v1394_v42  ;;  %v1424_v49 = vsel %vm1406_vm2, %v1343_v3, %v1400_v43 }
 0x4cb   :  { %1431 = vst [vmem:[%s2949_s10 + $0x18] sm:$0xff] %v1425_v13  ;;  %1437 = vst [vmem:[%s2950_s11 + $0x18] sm:$0xff] %v1419_v10 }
 0x4cc   :  { %1430 = vst [vmem:[%s2949_s10 + $0x10] sm:$0xff] %v1424_v49  ;;  %1436 = vst [vmem:[%s2950_s11 + $0x10] sm:$0xff] %v1418_v14  ;;  %v1349_v0 = vpop.permute.xlu1 %1348  ;;  %v1347_v5 = vpop.permute.xlu0 %1346 }
 0x4cd   :  { %vm1409_vm3 = vcmp.gt.f32.partialorder %v1349_v0, %v1403_v7  ;;  %vm1408_vm4 = vcmp.gt.f32.partialorder %v1347_v5, %v1402_v15 }
 0x4ce   :  { %v1421_v17 = vsel %vm1409_vm3, %v1415_v55, %v1397_v60  ;;  %v1427_v8 = vsel %vm1409_vm3, %v1349_v0, %v1403_v7  ;;  %v1420_v20 = vsel %vm1408_vm4, %v1414_v57, %v1396_v16  ;;  %v1426_v18 = vsel %vm1408_vm4, %v1347_v5, %v1402_v15 }
 0x4cf   :  { %1433 = vst [vmem:[%s2949_s10 + $0x28] sm:$0xff] %v1427_v8  ;;  %1439 = vst [vmem:[%s2950_s11 + $0x28] sm:$0xff] %v1421_v17 }
 0x4d0   :  { %1432 = vst [vmem:[%s2949_s10 + $0x20] sm:$0xff] %v1426_v18  ;;  %1438 = vst [vmem:[%s2950_s11 + $0x20] sm:$0xff] %v1420_v20 }

</bundles_post_ra>
